<compile_context>
chip_gen: v7x
topology: tpu7x:2x2x1
jax: 0.10.0
libtpu: 0.0.40
codegen_flags: <defaults>
</compile_context>

<pallas_src>
import functools

import jax
import jax.numpy as jnp
from jax import lax
from jax.experimental import pallas as pl
from jax.experimental.pallas import tpu as pltpu


def gqa_kernel(x_ref, wq_ref, wkv_ref, o_ref, k_sc, v_sc, *, hpg, head_dim, tq):
    """One grid step = (batch b, KV group g, query tile qi).

    x_ref   : (1, seq, dim)            activations; block index depends only on b,
                                       so the tile stays resident across g and qi.
    wq_ref  : (1, dim, hpg*head_dim)   pre-transposed Q weights for this group.
    wkv_ref : (1, dim, 2*head_dim)     pre-transposed [K | V] weights for this group.
    o_ref   : (1, tq, hpg*head_dim)    this (q-tile, group) slab of the (bs, seq, dim) output.
    k_sc    : (seq, head_dim) VMEM     group K, computed once per (b, g) at qi == 0.
    v_sc    : (seq, head_dim) VMEM     group V, computed once per (b, g) at qi == 0.
    """
    qi = pl.program_id(2)
    cdt = x_ref.dtype  # MXU operand dtype (input dtype); accumulation stays f32.

    # K/V projection over the whole sequence, done once per (b, g) and reused by
    # every q-tile and every query head of the group.
    @pl.when(qi == 0)
    def _():
        kv = jnp.dot(x_ref[0], wkv_ref[0],
                     preferred_element_type=jnp.float32)          # (seq, 2*head_dim) f32
        k_sc[...] = kv[:, :head_dim].astype(k_sc.dtype)
        v_sc[...] = kv[:, head_dim:].astype(v_sc.dtype)

    # Q projection for this q-tile only — one fused, lane-dense matmul for all hpg heads.
    q_start = pl.multiple_of(qi * tq, tq)
    x_tile = x_ref[0, pl.ds(q_start, tq), :]                      # (tq, dim)
    q = jnp.dot(x_tile, wq_ref[0],
                preferred_element_type=jnp.float32).astype(cdt)   # (tq, hpg*head_dim)

    k = k_sc[...]                                                 # (seq, head_dim) cdt
    v = v_sc[...]                                                 # (seq, head_dim) cdt

    # Static unroll over this group's query heads; K/V reused from scratch.
    for h in range(hpg):
        qh = q[:, h * head_dim:(h + 1) * head_dim]                # (tq, head_dim)
        # q @ k^T without an explicit transpose: contract the head_dim axes.
        s = lax.dot_general(qh, k, (((1,), (1,)), ((), ())),
                            preferred_element_type=jnp.float32)   # (tq, seq) f32
        # NOTE: the reference module does NOT scale by 1/sqrt(head_dim).
        s = s - jnp.max(s, axis=-1, keepdims=True)
        p = jnp.exp(s)
        denom = jnp.sum(p, axis=-1, keepdims=True)                # (tq, 1) f32
        pv = jnp.dot(p.astype(cdt), v,
                     preferred_element_type=jnp.float32)          # (tq, head_dim) f32
        # Normalize AFTER the PV matmul (tq*head_dim work instead of tq*seq), exact divide.
        o_h = pv * (1.0 / denom)
        # Per-head write into the output block: bounds live ranges, no concat shuffles.
        # The HBM writeback is still one lane-dense (multiple-of-128) DMA per grid step.
        o_ref[0, :, h * head_dim:(h + 1) * head_dim] = o_h.astype(o_ref.dtype)


def _pick_q_tile(seq, q_block_max):
    """Largest divisor of seq that is <= q_block_max and a multiple of 8, else seq."""
    t = min(seq, max(int(q_block_max), 1))
    while t > 1:
        if seq % t == 0 and t % 8 == 0:
            return t
        t -= 1
    return seq


def _vmem_limit_bytes():
    """Derive a VMEM limit with headroom instead of requesting the full physical VMEM."""
    cap = None
    try:
        cap = pltpu.get_tpu_info().vmem_capacity_bytes
    except Exception:
        cap = None
    if not cap:
        cap = 64 * 1024 * 1024  # conservative (v7x per-TC capacity)
    # ~48 MiB on v7x (64 MiB phys), ~96 MiB on v5e/v6e (128 MiB phys), capped at 100 MiB.
    return min(int(cap * 3 // 4), 100 * 1024 * 1024)


def group_query_attention(x, wq, wk, wv, n_head, n_group, q_block=256):
    bs, seq, dim = x.shape
    assert dim % n_head == 0 and n_head % n_group == 0
    head_dim = dim // n_head
    hpg = n_head // n_group                  # query heads per KV group
    group_out = hpg * head_dim               # output columns per group

    # Lane-dense output block requirement (holds for the module's ModelArgs: 4*32 = 128).
    assert group_out % 128 == 0, (
        "hpg*head_dim must be a multiple of 128 for a lane-dense output block")
    # TODO(synk): pack multiple KV groups per grid step when group_out % 128 != 0.

    tq = _pick_q_tile(seq, q_block)
    assert seq % tq == 0

    # One-time weight prep (outside the kernel loop): per group, pre-transpose Q weights
    # and the concatenated [K ; V] weights to (dim, out) so the kernel feeds the MXU
    # directly with no in-kernel transposes.
    wq_g = jnp.swapaxes(wq.reshape(n_group, group_out, dim), 1, 2)     # (n_group, dim, group_out)
    wkv_g = jnp.swapaxes(
        jnp.concatenate([wk.reshape(n_group, head_dim, dim),
                         wv.reshape(n_group, head_dim, dim)], axis=1),
        1, 2)                                                          # (n_group, dim, 2*head_dim)

    kernel = functools.partial(gqa_kernel, hpg=hpg, head_dim=head_dim, tq=tq)

    return pl.pallas_call(
        kernel,
        out_shape=jax.ShapeDtypeStruct((bs, seq, dim), x.dtype),
        grid_spec=pltpu.PrefetchScalarGridSpec(
            num_scalar_prefetch=0,
            # b outer (TC-parallel), group middle, q-tile innermost (K/V scratch reuse).
            grid=(bs, n_group, seq // tq),
            in_specs=[
                # x block index depends only on b -> resident across g and qi.
                pl.BlockSpec((1, seq, dim), lambda b, g, qi: (b, 0, 0)),
                pl.BlockSpec((1, dim, group_out), lambda b, g, qi: (g, 0, 0)),
                pl.BlockSpec((1, dim, 2 * head_dim), lambda b, g, qi: (g, 0, 0)),
            ],
            # Group g's heads occupy a contiguous, 128-aligned column block of the final
            # (bs, seq, dim) layout; q-tile qi selects the row block.
            out_specs=pl.BlockSpec((1, tq, group_out), lambda b, g, qi: (b, qi, g)),
            scratch_shapes=[
                pltpu.VMEM((seq, head_dim), x.dtype),   # K of current group
                pltpu.VMEM((seq, head_dim), x.dtype),   # V of current group
            ],
        ),
        compiler_params=pltpu.CompilerParams(
            # Megacore split on batch only: keeps x[b] residency intact; group/q-tile
            # axes carry the K/V-scratch dependency and run sequentially per core.
            dimension_semantics=("parallel", "arbitrary", "arbitrary"),
            vmem_limit_bytes=_vmem_limit_bytes()),
    )(x, wq_g, wkv_g)


def gqa_reference(x, wq, wk, wv, n_head, n_group):
    """Plain-JAX reference mirroring the PyTorch module exactly."""
    bs, seq, dim = x.shape
    head_dim = dim // n_head
    hpg = n_head // n_group
    xq = (x @ wq.T).reshape(bs, seq, n_head, head_dim).transpose(0, 2, 1, 3)
    xk = (x @ wk.T).reshape(bs, seq, n_group, head_dim).transpose(0, 2, 3, 1)
    xv = (x @ wv.T).reshape(bs, seq, n_group, head_dim).transpose(0, 2, 1, 3)
    xk = jnp.broadcast_to(xk[:, :, None], (bs, n_group, hpg, head_dim, seq)
                          ).reshape(bs, n_head, head_dim, seq)
    xv = jnp.broadcast_to(xv[:, :, None], (bs, n_group, hpg, seq, head_dim)
                          ).reshape(bs, n_head, seq, head_dim)
    score = jax.nn.softmax(xq @ xk, axis=-1)
    attn = score @ xv
    return attn.transpose(0, 2, 1, 3).reshape(bs, seq, dim)


if __name__ == "__main__":
    # Small shapes consistent with the module (dim % n_head == 0, n_head % n_group == 0).
    # head_dim = 32, hpg = 4 -> each group's output block is 128 columns (lane-aligned).
    bs, seq = 2, 128
    dim, n_head, n_group = 256, 8, 2
    head_dim = dim // n_head

    key = jax.random.PRNGKey(0)
    kx, kq, kk, kv = jax.random.split(key, 4)
    x = jax.random.normal(kx, (bs, seq, dim), dtype=jnp.float32)
    # Deterministic "Linear" weights (out_features, in_features), no bias.
    wq = jax.random.normal(kq, (dim, dim), dtype=jnp.float32) / jnp.sqrt(dim)
    wk = jax.random.normal(kk, (n_group * head_dim, dim), dtype=jnp.float32) / jnp.sqrt(dim)
    wv = jax.random.normal(kv, (n_group * head_dim, dim), dtype=jnp.float32) / jnp.sqrt(dim)

    # q_block=32 -> 4 q-tiles per (batch, group): exercises the seq-tiled path.
    out = group_query_attention(x, wq, wk, wv, n_head, n_group, q_block=32)
    out = jax.block_until_ready(out)

    ref = gqa_reference(x, wq, wk, wv, n_head, n_group)
    assert out.shape == (bs, seq, dim)
    assert jnp.allclose(out, ref, atol=2e-3, rtol=2e-3), "mismatch vs reference"

    print("KERNEL_OK")
</pallas_src>

<mosaic_0001>
module attributes {stable_mosaic.version = 11 : i64} {
  func.func @gqa_kernel(%arg0: i32, %arg1: i32, %arg2: i32, %arg3: memref<1x128x256xf32, #tpu.memory_space<vmem>>, %arg4: memref<1x256x128xf32, #tpu.memory_space<vmem>>, %arg5: memref<1x256x64xf32, #tpu.memory_space<vmem>>, %arg6: memref<1x32x128xf32, #tpu.memory_space<vmem>>, %arg7: memref<128x32xf32, #tpu.memory_space<vmem>>, %arg8: memref<128x32xf32, #tpu.memory_space<vmem>>) attributes {dimension_semantics = [#tpu.dimension_semantics<parallel>, #tpu.dimension_semantics<arbitrary>, #tpu.dimension_semantics<arbitrary>], iteration_bounds = array<i64: 2, 2, 4>, scalar_prefetch = 0 : i64, scratch_operands = 2 : i64, tpu.core_type = #tpu.core_type<tc>, window_params = [{transform_indices = @transform_0, window_bounds = array<i64: 1, 128, 256>}, {transform_indices = @transform_1, window_bounds = array<i64: 1, 256, 128>}, {transform_indices = @transform_2, window_bounds = array<i64: 1, 256, 64>}, {transform_indices = @transform_3, window_bounds = array<i64: 1, 32, 128>}]} {
    %c0_i32 = arith.constant 0 : i32
    %0 = arith.cmpi eq, %arg2, %c0_i32 : i32
    %1 = arith.extui %0 : i1 to i32
    %c0_i32_0 = arith.constant 0 : i32
    %2 = arith.cmpi ne, %1, %c0_i32_0 : i32
    scf.if %2 {
      %c0_38 = arith.constant 0 : index
      %c0_39 = arith.constant 0 : index
      %c0_40 = arith.constant 0 : index
      %81 = vector.load %arg3[%c0_38, %c0_39, %c0_40] : memref<1x128x256xf32, #tpu.memory_space<vmem>>, vector<1x128x256xf32>
      %82 = vector.shape_cast %81 : vector<1x128x256xf32> to vector<128x256xf32>
      %c0_41 = arith.constant 0 : index
      %c0_42 = arith.constant 0 : index
      %c0_43 = arith.constant 0 : index
      %83 = vector.load %arg5[%c0_41, %c0_42, %c0_43] : memref<1x256x64xf32, #tpu.memory_space<vmem>>, vector<1x256x64xf32>
      %84 = vector.shape_cast %83 : vector<1x256x64xf32> to vector<256x64xf32>
      %cst_44 = arith.constant dense<0.000000e+00> : vector<128x64xf32>
      %85 = tpu.matmul %82, %84, %cst_44 {dimension_numbers = #tpu.dot_dimension_numbers<[1], [0], [0], [1], [0, 0, 1, 1], [], []>} : vector<128x256xf32>, vector<256x64xf32>, vector<128x64xf32> -> vector<128x64xf32>
      %86 = vector.extract_strided_slice %85 {offsets = [0, 0], sizes = [128, 32], strides = [1, 1]} : vector<128x64xf32> to vector<128x32xf32>
      %c0_45 = arith.constant 0 : index
      %c0_46 = arith.constant 0 : index
      %87 = vector.load %arg7[%c0_45, %c0_46] : memref<128x32xf32, #tpu.memory_space<vmem>>, vector<128x32xf32>
      tpu.vector_store %arg7[%c0_45, %c0_46], %86 {strides = array<i32>} : memref<128x32xf32, #tpu.memory_space<vmem>>, vector<128x32xf32>,
      %88 = vector.extract_strided_slice %85 {offsets = [0, 32], sizes = [128, 32], strides = [1, 1]} : vector<128x64xf32> to vector<128x32xf32>
      %c0_47 = arith.constant 0 : index
      %c0_48 = arith.constant 0 : index
      %89 = vector.load %arg8[%c0_47, %c0_48] : memref<128x32xf32, #tpu.memory_space<vmem>>, vector<128x32xf32>
      tpu.vector_store %arg8[%c0_47, %c0_48], %88 {strides = array<i32>} : memref<128x32xf32, #tpu.memory_space<vmem>>, vector<128x32xf32>,
    } else {
    }
    %c32_i32 = arith.constant 32 : i32
    %3 = arith.muli %arg2, %c32_i32 : i32
    %4 = tpu.assume_multiple %3, 32 : i32
    %c0 = arith.constant 0 : index
    %5 = arith.index_cast %4 : i32 to index
    %c0_1 = arith.constant 0 : index
    %6 = vector.load %arg3[%c0, %5, %c0_1] : memref<1x128x256xf32, #tpu.memory_space<vmem>>, vector<1x32x256xf32>
    %7 = vector.shape_cast %6 : vector<1x32x256xf32> to vector<32x256xf32>
    %c0_2 = arith.constant 0 : index
    %c0_3 = arith.constant 0 : index
    %c0_4 = arith.constant 0 : index
    %8 = vector.load %arg4[%c0_2, %c0_3, %c0_4] : memref<1x256x128xf32, #tpu.memory_space<vmem>>, vector<1x256x128xf32>
    %9 = vector.shape_cast %8 : vector<1x256x128xf32> to vector<256x128xf32>
    %cst = arith.constant dense<0.000000e+00> : vector<32x128xf32>
    %10 = tpu.matmul %7, %9, %cst {dimension_numbers = #tpu.dot_dimension_numbers<[1], [0], [0], [1], [0, 0, 1, 1], [], []>} : vector<32x256xf32>, vector<256x128xf32>, vector<32x128xf32> -> vector<32x128xf32>
    %c0_5 = arith.constant 0 : index
    %c0_6 = arith.constant 0 : index
    %11 = vector.load %arg7[%c0_5, %c0_6] : memref<128x32xf32, #tpu.memory_space<vmem>>, vector<128x32xf32>
    %c0_7 = arith.constant 0 : index
    %c0_8 = arith.constant 0 : index
    %12 = vector.load %arg8[%c0_7, %c0_8] : memref<128x32xf32, #tpu.memory_space<vmem>>, vector<128x32xf32>
    %13 = vector.extract_strided_slice %10 {offsets = [0, 0], sizes = [32, 32], strides = [1, 1]} : vector<32x128xf32> to vector<32x32xf32>
    %cst_9 = arith.constant dense<0.000000e+00> : vector<32x128xf32>
    %14 = tpu.matmul %13, %11, %cst_9 {dimension_numbers = #tpu.dot_dimension_numbers<[1], [1], [0], [0], [0, 0, 1, 0], [], []>} : vector<32x32xf32>, vector<128x32xf32>, vector<32x128xf32> -> vector<32x128xf32>
    %cst_10 = arith.constant dense<0xFF800000> : vector<32xf32>
    %15 = vector.multi_reduction <maximumf>, %14, %cst_10 [1] : vector<32x128xf32> to vector<32xf32>
    %16 = vector.shape_cast %15 : vector<32xf32> to vector<32x1xf32>
    %17 = vector.broadcast %16 : vector<32x1xf32> to vector<32x128xf32>
    %18 = arith.subf %14, %17 : vector<32x128xf32>
    %19 = math.exp %18 : vector<32x128xf32>
    %cst_11 = arith.constant dense<0.000000e+00> : vector<32xf32>
    %20 = vector.multi_reduction <add>, %19, %cst_11 [1] : vector<32x128xf32> to vector<32xf32>
    %21 = vector.shape_cast %20 : vector<32xf32> to vector<32x1xf32>
    %cst_12 = arith.constant dense<0.000000e+00> : vector<32x32xf32>
    %22 = tpu.matmul %19, %12, %cst_12 {dimension_numbers = #tpu.dot_dimension_numbers<[1], [0], [0], [1], [0, 0, 1, 1], [], []>} : vector<32x128xf32>, vector<128x32xf32>, vector<32x32xf32> -> vector<32x32xf32>
    %cst_13 = arith.constant 1.000000e+00 : f32
    %23 = vector.broadcast %cst_13 : f32 to vector<32x1xf32>
    %24 = arith.divf %23, %21 : vector<32x1xf32>
    %25 = vector.broadcast %24 : vector<32x1xf32> to vector<32x32xf32>
    %26 = arith.mulf %22, %25 : vector<32x32xf32>
    %c0_14 = arith.constant 0 : index
    %c0_15 = arith.constant 0 : index
    %c0_16 = arith.constant 0 : index
    %27 = vector.load %arg6[%c0_14, %c0_15, %c0_16] : memref<1x32x128xf32, #tpu.memory_space<vmem>>, vector<1x32x32xf32>
    %28 = vector.shape_cast %27 : vector<1x32x32xf32> to vector<32x32xf32>
    %29 = vector.shape_cast %26 : vector<32x32xf32> to vector<1x32x32xf32>
    tpu.vector_store %arg6[%c0_14, %c0_15, %c0_16], %29 {strides = array<i32>} : memref<1x32x128xf32, #tpu.memory_space<vmem>>, vector<1x32x32xf32>,
    %30 = vector.extract_strided_slice %10 {offsets = [0, 32], sizes = [32, 32], strides = [1, 1]} : vector<32x128xf32> to vector<32x32xf32>
    %cst_17 = arith.constant dense<0.000000e+00> : vector<32x128xf32>
    %31 = tpu.matmul %30, %11, %cst_17 {dimension_numbers = #tpu.dot_dimension_numbers<[1], [1], [0], [0], [0, 0, 1, 0], [], []>} : vector<32x32xf32>, vector<128x32xf32>, vector<32x128xf32> -> vector<32x128xf32>
    %cst_18 = arith.constant dense<0xFF800000> : vector<32xf32>
    %32 = vector.multi_reduction <maximumf>, %31, %cst_18 [1] : vector<32x128xf32> to vector<32xf32>
    %33 = vector.shape_cast %32 : vector<32xf32> to vector<32x1xf32>
    %34 = vector.broadcast %33 : vector<32x1xf32> to vector<32x128xf32>
    %35 = arith.subf %31, %34 : vector<32x128xf32>
    %36 = math.exp %35 : vector<32x128xf32>
    %cst_19 = arith.constant dense<0.000000e+00> : vector<32xf32>
    %37 = vector.multi_reduction <add>, %36, %cst_19 [1] : vector<32x128xf32> to vector<32xf32>
    %38 = vector.shape_cast %37 : vector<32xf32> to vector<32x1xf32>
    %cst_20 = arith.constant dense<0.000000e+00> : vector<32x32xf32>
    %39 = tpu.matmul %36, %12, %cst_20 {dimension_numbers = #tpu.dot_dimension_numbers<[1], [0], [0], [1], [0, 0, 1, 1], [], []>} : vector<32x128xf32>, vector<128x32xf32>, vector<32x32xf32> -> vector<32x32xf32>
    %cst_21 = arith.constant 1.000000e+00 : f32
    %40 = vector.broadcast %cst_21 : f32 to vector<32x1xf32>
    %41 = arith.divf %40, %38 : vector<32x1xf32>
    %42 = vector.broadcast %41 : vector<32x1xf32> to vector<32x32xf32>
    %43 = arith.mulf %39, %42 : vector<32x32xf32>
    %c0_22 = arith.constant 0 : index
    %c0_23 = arith.constant 0 : index
    %c32 = arith.constant 32 : index
    %44 = vector.load %arg6[%c0_22, %c0_23, %c32] : memref<1x32x128xf32, #tpu.memory_space<vmem>>, vector<1x32x32xf32>
    %45 = vector.shape_cast %44 : vector<1x32x32xf32> to vector<32x32xf32>
    %46 = vector.shape_cast %43 : vector<32x32xf32> to vector<1x32x32xf32>
    tpu.vector_store %arg6[%c0_22, %c0_23, %c32], %46 {strides = array<i32>} : memref<1x32x128xf32, #tpu.memory_space<vmem>>, vector<1x32x32xf32>,
    %47 = vector.extract_strided_slice %10 {offsets = [0, 64], sizes = [32, 32], strides = [1, 1]} : vector<32x128xf32> to vector<32x32xf32>
    %cst_24 = arith.constant dense<0.000000e+00> : vector<32x128xf32>
    %48 = tpu.matmul %47, %11, %cst_24 {dimension_numbers = #tpu.dot_dimension_numbers<[1], [1], [0], [0], [0, 0, 1, 0], [], []>} : vector<32x32xf32>, vector<128x32xf32>, vector<32x128xf32> -> vector<32x128xf32>
    %cst_25 = arith.constant dense<0xFF800000> : vector<32xf32>
    %49 = vector.multi_reduction <maximumf>, %48, %cst_25 [1] : vector<32x128xf32> to vector<32xf32>
    %50 = vector.shape_cast %49 : vector<32xf32> to vector<32x1xf32>
    %51 = vector.broadcast %50 : vector<32x1xf32> to vector<32x128xf32>
    %52 = arith.subf %48, %51 : vector<32x128xf32>
    %53 = math.exp %52 : vector<32x128xf32>
    %cst_26 = arith.constant dense<0.000000e+00> : vector<32xf32>
    %54 = vector.multi_reduction <add>, %53, %cst_26 [1] : vector<32x128xf32> to vector<32xf32>
    %55 = vector.shape_cast %54 : vector<32xf32> to vector<32x1xf32>
    %cst_27 = arith.constant dense<0.000000e+00> : vector<32x32xf32>
    %56 = tpu.matmul %53, %12, %cst_27 {dimension_numbers = #tpu.dot_dimension_numbers<[1], [0], [0], [1], [0, 0, 1, 1], [], []>} : vector<32x128xf32>, vector<128x32xf32>, vector<32x32xf32> -> vector<32x32xf32>
    %cst_28 = arith.constant 1.000000e+00 : f32
    %57 = vector.broadcast %cst_28 : f32 to vector<32x1xf32>
    %58 = arith.divf %57, %55 : vector<32x1xf32>
    %59 = vector.broadcast %58 : vector<32x1xf32> to vector<32x32xf32>
    %60 = arith.mulf %56, %59 : vector<32x32xf32>
    %c0_29 = arith.constant 0 : index
    %c0_30 = arith.constant 0 : index
    %c64 = arith.constant 64 : index
    %61 = vector.load %arg6[%c0_29, %c0_30, %c64] : memref<1x32x128xf32, #tpu.memory_space<vmem>>, vector<1x32x32xf32>
    %62 = vector.shape_cast %61 : vector<1x32x32xf32> to vector<32x32xf32>
    %63 = vector.shape_cast %60 : vector<32x32xf32> to vector<1x32x32xf32>
    tpu.vector_store %arg6[%c0_29, %c0_30, %c64], %63 {strides = array<i32>} : memref<1x32x128xf32, #tpu.memory_space<vmem>>, vector<1x32x32xf32>,
    %64 = vector.extract_strided_slice %10 {offsets = [0, 96], sizes = [32, 32], strides = [1, 1]} : vector<32x128xf32> to vector<32x32xf32>
    %cst_31 = arith.constant dense<0.000000e+00> : vector<32x128xf32>
    %65 = tpu.matmul %64, %11, %cst_31 {dimension_numbers = #tpu.dot_dimension_numbers<[1], [1], [0], [0], [0, 0, 1, 0], [], []>} : vector<32x32xf32>, vector<128x32xf32>, vector<32x128xf32> -> vector<32x128xf32>
    %cst_32 = arith.constant dense<0xFF800000> : vector<32xf32>
    %66 = vector.multi_reduction <maximumf>, %65, %cst_32 [1] : vector<32x128xf32> to vector<32xf32>
    %67 = vector.shape_cast %66 : vector<32xf32> to vector<32x1xf32>
    %68 = vector.broadcast %67 : vector<32x1xf32> to vector<32x128xf32>
    %69 = arith.subf %65, %68 : vector<32x128xf32>
    %70 = math.exp %69 : vector<32x128xf32>
    %cst_33 = arith.constant dense<0.000000e+00> : vector<32xf32>
    %71 = vector.multi_reduction <add>, %70, %cst_33 [1] : vector<32x128xf32> to vector<32xf32>
    %72 = vector.shape_cast %71 : vector<32xf32> to vector<32x1xf32>
    %cst_34 = arith.constant dense<0.000000e+00> : vector<32x32xf32>
    %73 = tpu.matmul %70, %12, %cst_34 {dimension_numbers = #tpu.dot_dimension_numbers<[1], [0], [0], [1], [0, 0, 1, 1], [], []>} : vector<32x128xf32>, vector<128x32xf32>, vector<32x32xf32> -> vector<32x32xf32>
    %cst_35 = arith.constant 1.000000e+00 : f32
    %74 = vector.broadcast %cst_35 : f32 to vector<32x1xf32>
    %75 = arith.divf %74, %72 : vector<32x1xf32>
    %76 = vector.broadcast %75 : vector<32x1xf32> to vector<32x32xf32>
    %77 = arith.mulf %73, %76 : vector<32x32xf32>
    %c0_36 = arith.constant 0 : index
    %c0_37 = arith.constant 0 : index
    %c96 = arith.constant 96 : index
    %78 = vector.load %arg6[%c0_36, %c0_37, %c96] : memref<1x32x128xf32, #tpu.memory_space<vmem>>, vector<1x32x32xf32>
    %79 = vector.shape_cast %78 : vector<1x32x32xf32> to vector<32x32xf32>
    %80 = vector.shape_cast %77 : vector<32x32xf32> to vector<1x32x32xf32>
    tpu.vector_store %arg6[%c0_36, %c0_37, %c96], %80 {strides = array<i32>} : memref<1x32x128xf32, #tpu.memory_space<vmem>>, vector<1x32x32xf32>,
    return
  }
  func.func @transform_0(%arg0: i32, %arg1: i32, %arg2: i32) -> (i32, i32, i32) {
    %c0_i32 = arith.constant 0 : i32
    %c0_i32_0 = arith.constant 0 : i32
    %c0_i32_1 = arith.constant 0 : i32
    return %arg0, %c0_i32, %c0_i32_0 : i32, i32, i32
  }
  func.func @transform_1(%arg0: i32, %arg1: i32, %arg2: i32) -> (i32, i32, i32) {
    %c0_i32 = arith.constant 0 : i32
    %c0_i32_0 = arith.constant 0 : i32
    %c0_i32_1 = arith.constant 0 : i32
    return %arg1, %c0_i32, %c0_i32_0 : i32, i32, i32
  }
  func.func @transform_2(%arg0: i32, %arg1: i32, %arg2: i32) -> (i32, i32, i32) {
    %c0_i32 = arith.constant 0 : i32
    %c0_i32_0 = arith.constant 0 : i32
    %c0_i32_1 = arith.constant 0 : i32
    return %arg1, %c0_i32, %c0_i32_0 : i32, i32, i32
  }
  func.func @transform_3(%arg0: i32, %arg1: i32, %arg2: i32) -> (i32, i32, i32) {
    %c0_i32 = arith.constant 0 : i32
    return %arg0, %arg2, %arg1 : i32, i32, i32
  }
}

</mosaic_0001>

<bundles_post_ra>
// kernel: tpu_custom_call.1
= control target key start
LH: loop header
LB: loop body
LE: loop exit
PB: predicated region body
PF: predicated region fallthrough
CT: control target
= control target key end

     0   :  { %s4260_s0 = inlined_call_operand.vmem [shape: f32[2,128,256], index: 0, kind: input, shape index: {}]   ;;  %s4261_s1 = inlined_call_operand.hbm [shape: f32[2,256,128], index: 1, kind: input, shape index: {}]   ;;  %s4262_s2 = inlined_call_operand.vmem [shape: f32[2,256,64], index: 2, kind: input, shape index: {}]   ;;  %s4263_s3 = inlined_call_operand.hbm [shape: f32[2,128,256], index: 3, kind: output, shape index: {}]  }
   0x1   :  { %4270 = sst [smem:[#allocation15_spill]] %s4261_s1 }
   0x2   :  { %8 = vsyncpa [#allocation5], 0 }
   0x3   :  { %10 = vsyncpa [#allocation5 + $0x1], 0 }
   0x4   :  { %11 = vsyncpa [#allocation6], 0 }
   0x5   :  { %13 = vsyncpa [#allocation6 + $0x1], 0  ;;  %s3370_s12 = smov 0   ;;  %s3372_s13 = smov 0  }
   0x6   :  { %s3374_s14 = smov 0   ;;  %s3376_s15 = smov 0  }
   0x7   :  { %s3378_s16 = smov 0   ;;  %s3380_s17 = smov 0  }
   0x8   :  { %s3382_s18 = smov 0   ;;  %s3384_s19 = smov 0  }
   0x9   :  { %s3386_s20 = smov 0   ;;  %s3388_s21 = smov 0  }
   0xa   :  { %s3390_s22 = smov 0   ;;  %s3392_s23 = smov 0  }
   0xb   :  { %s3394_s24 = smov 0  }
   0xc LB: > { %4271 = sst [smem:[#allocation10_spill]] %s3329_s22  ;;  %s1880_s25 = sadd.s32 4294967295, %s3337_s24   ;;  %s3337_s24 = sphi %s3394_s24, %s19_s24   ;;  %s3333_s23 = sphi %s3392_s23, %s4293_s23   ;;  %s3329_s22 = sphi %s3390_s22, %s4292_s22   ;;  %s3325_s21 = sphi %s3388_s21, %s4303_s21   ;;  %s3321_s20 = sphi %s3386_s20, %s4302_s20   ;;  %s3317_s19 = sphi %s3384_s19, %s4289_s19   ;;  %s3313_s18 = sphi %s3382_s18, %s4301_s18   ;;  %s3309_s17 = sphi %s3380_s17, %s4300_s17   ;;  %s3305_s16 = sphi %s3378_s16, %s4299_s16   ;;  %s3301_s15 = sphi %s3376_s15, %s4298_s15   ;;  %s3297_s14 = sphi %s3374_s14, %s4297_s14   ;;  %s3293_s13 = sphi %s3372_s13, %s4296_s13   ;;  %s3289_s12 = sphi %s3370_s12, %s4295_s12  }
   0xd   : > { %4272 = sst [smem:[#allocation11_spill]] %s3333_s23  ;;  %s31_s27 = sadd.s32 1, %s3325_s21 }
   0xe   : > { %s34_s28 = sadd.s32 1, %s3329_s22  ;;  %p32_p0 = scmp.ge.s32.totalorder %s31_s27, 4 }
   0xf   : > { %s38_s29 = sadd.s32 1, %s3333_s23  ;;  %s71_s30 = sadd.s32 1, %s3309_s17 }
  0x10   : > { %p78_p1 = scmp.ne.s32.totalorder %s3309_s17, %s3305_s16  ;;  %s4305_s27 = smov (%p32_p0, %s31_s27), 0 }
  0x11   : > { %4273 = sst [smem:[#allocation12_spill]] %s4305_s27  ;;  %s4307_s28 = smov (!%p32_p0, %s34_s28), %s3329_s22 }
  0x12   : > { %p79_p2 = scmp.eq.s32.totalorder %s3337_s24, 0  ;;  %p84_p3 = scmp.ne.s32.totalorder %s3305_s16, %s3301_s15 }
  0x13   : > { %p36_p4 = scmp.ge.s32.totalorder %s4307_s28, 2  ;;  %p85_p5 = scmp.eq.s32.totalorder %s1880_s25, 0 }
  0x14   : > { %p3449_p6 = por %p79_p2, %p78_p1  ;;  %s121_s5 = ssub.s32 %s3325_s21, %s4305_s27 }
  0x15   : > { %s4309_s28 = smov (%p36_p4, %s4307_s28), 0  ;;  %s4311_s29 = smov (!%p36_p4, %s38_s29), %s3333_s23 }
  0x16   : > { %4275 = sst [smem:[#allocation13_spill]] %s4309_s28  ;;  %s68_s6 = ssub.s32 %s3329_s22, %s4309_s28 }
  0x17   : > { %p3460_p7 = por %p85_p5, %p84_p3  ;;  %p40_p8 = scmp.ge.s32.totalorder %s4311_s29, 2 }
  0x18   : > { %p69_p9 = scmp.eq.s32.totalorder %s68_s6, 0  ;;  %s127_s8 = sadd.s32 1, %s3297_s14 }
  0x19   : > { %p137_p10 = scmp.ne.s32.totalorder %s3297_s14, %s3293_s13  ;;  %s4313_s29 = smov (%p40_p8, %s4311_s29), 0 }
  0x1a   : > { %4277 = sst [smem:[#allocation14_spill]] %s4313_s29  ;;  %s120_s10 = ssub.s32 %s3333_s23, %s4313_s29 }
  0x1b   : > { %s3470_s9 = scalar_select %p69_p9, %s3309_s17, %s71_s30  }
  0x1c   : > { %p138_p11 = scmp.eq.s32.totalorder %s1880_s25, 15  ;;  %s122_s11 = sor.u32 %s121_s5, %s120_s10 }
  0x1d   : > { %p143_p12 = scmp.ne.s32.totalorder %s3293_s13, %s3289_s12  ;;  %s124_s15 = sor.u32 %s122_s11, %s68_s6 }
  0x1e   : > { %p3476_p13 = por %p138_p11, %p137_p10  ;;  %p125_p0 = scmp.eq.s32.totalorder %s124_s15, 0 }
  0x1f   : > { %s4279_s28 = sadd.s32 4294967294, %s3337_s24   ;;  %p2990_p2 = scmp.lt.s32.totalorder %s3337_s24, 16 }
  0x20   : > { %s4278_s26 = scalar_select %p3476_p13, 1, 0 }
  0x21   : > { %p144_p1 = scmp.eq.s32.totalorder %s4279_s28, 15  ;;  %s172_s25 = sand.u32 1, %s3309_s17  }
  0x22   : > { %s3484_s27 = scalar_select %p125_p0, %s3297_s14, %s127_s8  }
  0x23   : > { %p3486_p3 = por %p144_p1, %p143_p12  ;;  %s1884_s5 = sshll.u32 %s172_s25, 8 }
  0x24   : > { %s1985_s10 = sshll.u32 %s3329_s22, 12  ;;  %s4281_s1 = sld [smem:[#allocation15_spill]] }
  0x25   : > { %s4280_s30 = scalar_select %p3486_p3, 1, 0 }
  0x26   : > { %s176_s28 = scalar_lea.vmem [#allocation4], %s1884_s5  ;;  %p3501_p4 = pnand %p2990_p2, %p3449_p6 }
  0x27   : > { %s183_s11 = sshll.u32 %s176_s28, 4  ;;  %s3506_s15 = scalar_lea.sflag [#allocation5], %s172_s25  ;;  %s3497_s11 = int_to_ptr.vmem [resolvable:$true] %s183_s11 }
  0x28   : > { %p3171_p9 = pneg %p3501_p4 }
  0x2a   : > { %s3495_s6 = scalar_lea.hbm %s4281_s1, %s1985_s10  ;;  %s3174_s4 = scalar_lea.hbm %s4281_s1, 8192 }
  0x2b   : > { %s3169_s23 = scalar_lea.hbm %s3495_s6, 4096  ;;  %p3175_p6 = scmp.lt.u32.totalorder %s3495_s6, %s4281_s1 }
  0x2c   : > { %p3170_p8 = scmp.ne.s32.totalorder %s3495_s6, %s3169_s23  ;;  %p3176_p12 = scmp.lt.u32.totalorder %s3174_s4, %s3169_s23 }
  0x2d   : > { %p3178_p1 = scmp.lt.u32.totalorder %s3169_s23, %s3495_s6 }
  0x2e   : > { %p3172_p10 = pnand %p3171_p9, %p3170_p8  ;;  %p3177_p0 = por %p3176_p12, %p3175_p6 }
  0x30   : > { %p3173_p11 = pneg %p3172_p10  ;;  %p3179_p2 = por %p3178_p1, %p3177_p0 }
  0x32   : > { %p3180_p5 = pnand %p3179_p2, %p3173_p11 }
  0x34   : > { %3183 = shalt.err (!%p3180_p5)
}
  0x35   : > { %s3184_s25 = scalar_lea.vmem %s3497_s11, 4096  ;;  %s3339_s29 = smov [#allocation4]  }
  0x36   : > { %p3185_p8 = scmp.ne.s32.totalorder %s3497_s11, %s3184_s25  ;;  %s3189_s5 = sshll.u32 %s3339_s29, 4  ;;  %s3190_s5 = int_to_ptr.vmem [resolvable:$false] %s3189_s5 }
  0x37   : > { %s3191_s10 = scalar_lea.vmem %s3190_s5, 8192  ;;  %p3192_p13 = scmp.lt.s32.totalorder %s3497_s11, %s3190_s5 }
  0x38   : > { %p3187_p10 = pnand %p3185_p8, %p3171_p9  ;;  %p3193_p6 = scmp.lt.s32.totalorder %s3191_s10, %s3184_s25 }
  0x3a   : > { %p3188_p3 = pneg %p3187_p10  ;;  %p3194_p12 = por %p3193_p6, %p3192_p13 }
  0x3c   : > { %p3195_p0 = pnand %p3194_p12, %p3188_p3 }
  0x3e   : > { %3198 = shalt.err (!%p3195_p0)
}
  0x3f   : > { %s3340_s23 = smov 128   ;;  %s3341_s4 = smov 8  }
  0x40   : > { %2985 = dma.hbm_to_vmem [thread:$0]  (!%p3501_p4), %s3495_s6, 4096, %s3497_s11, %s3506_s15, %s3340_s23, %s3340_s23, %s3341_s4  }
  0x41   : > { %p199_p5 = scmp.lt.s32.totalorder %s3337_s24, 17  ;;  %p4283_p9 = scmp.ge.s32.totalorder %s3337_s24, 1 }
  0x43   : > { %p200_p11 = pnand %p4283_p9, %p199_p5 }
  0x44   : > { %s205_s28 = sand.u32 (!%p200_p11), 1, %s3305_s16  }
  0x45   : > { %203 = sbr.rel (%p200_p11) target bundleno = 2769 (0xad1), region = 32  ;;  %s1888_s25 = sshll.u32 (!%p200_p11), %s205_s28, 8 }
  0x46   : > { %s206_s29 = scalar_lea.sflag (!%p200_p11), [#allocation5], %s205_s28  ;;  %s3538_s5 = scalar_lea.vmem (!%p200_p11), [#allocation4], %s1888_s25 }
  0x4c   : > { %3280 = dma.done.wait (%p3460_p7), %s206_s29, 4096  }
  0x4d   : > { %3282 = vsyncadd (%p3460_p7), %s206_s29, 4294963200  ;;  %s239_s6 = sand.u32 1, %s3293_s13   ;;  %p242_p13 = scmp.lt.s32.totalorder %s3321_s20, 1 }
  0x4e   : > { %s1889_s11 = sshll.u32 %s239_s6, 5  ;;  %p247_p3 = scmp.lt.s32.totalorder %s3317_s19, 1 }
  0x4f   : > { %s243_s8 = scalar_select %p242_p13, %s3321_s20, 1 }
  0x50   : > { %s248_s15 = scalar_select %p247_p3, %s3317_s19, 1 }
  0x51   : > { %s1986_s10 = sshll.u32 %s243_s8, 8  ;;  %s3561_s22 = scalar_lea.vmem [#allocation7], %s1889_s11 }
  0x52   : > { %s3554_s28 = scalar_lea.vmem %s4260_s0, %s1986_s10  ;;  %s1987_s7 = sshll.u32 %s248_s15, 8 }
  0x53   : > { %s3559_s1 = scalar_lea.vmem %s4262_s2, %s1987_s7  ;;  %p1894_p7 = scmp.ne.s32.totalorder %s3313_s18, 0 }
  0x54   : > { %v305_v0 = vld [vmem:[%s3559_s1 + $0x80] sm:$0xff] (!%p1894_p7)  ;;  %v306_v1 = vld [vmem:[%s3559_s1 + $0x88] sm:$0xff] (!%p1894_p7)  ;;  %v307_v5 = vld [vmem:[%s3559_s1 + $0x90] sm:$0xff] (!%p1894_p7)  ;;  %vm466_vm0 = vcmask (!%p1894_p7), 261120  }
  0x55   : > { %256 = sbr.rel (%p1894_p7) target bundleno = 482 (0x1e2), region = 40  ;;  %v289_v2 = vld [vmem:[%s3559_s1] sm:$0xff] (!%p1894_p7)  ;;  %v2578_v3 = vpack.c.bf16 (!%p1894_p7), %v306_v1, %v305_v0  ;;  %v290_v4 = vld [vmem:[%s3559_s1 + $0x8] sm:$0xff] (!%p1894_p7)  ;;  %v308_v6 = vld [vmem:[%s3559_s1 + $0x98] sm:$0xff] (!%p1894_p7) }
  0x56   : > { %v2580_v7 = vpack.c.bf16 (!%p1894_p7), %v290_v4, %v289_v2  ;;  %v2582_v8 = vpack.c.bf16 (!%p1894_p7), %v308_v6, %v307_v5  ;;  %v291_v9 = vld [vmem:[%s3559_s1 + $0x10] sm:$0xff] (!%p1894_p7)  ;;  %v292_v10 = vld [vmem:[%s3559_s1 + $0x18] sm:$0xff] (!%p1894_p7)  ;;  %v309_v11 = vld [vmem:[%s3559_s1 + $0xa0] sm:$0xff] (!%p1894_p7) }
  0x57   : > { %2579 = vmatprep.subr.bf16.mxu0 (!%p1894_p7), %v2578_v3  ;;  %2962 = vmatprep.subr.bf16.mxu1 (!%p1894_p7), %v2578_v3  ;;  %v310_v12 = vld [vmem:[%s3559_s1 + $0xa8] sm:$0xff] (!%p1894_p7)  ;;  %v2584_v13 = vpack.c.bf16 (!%p1894_p7), %v292_v10, %v291_v9  ;;  %v293_v15 = vld [vmem:[%s3559_s1 + $0x20] sm:$0xff] (!%p1894_p7)  ;;  %v311_v17 = vld [vmem:[%s3559_s1 + $0xb0] sm:$0xff] (!%p1894_p7) }
  0x58   : > { %2581 = vmatpush3.bf16.msra.mxu0 (!%p1894_p7), %v2580_v7  ;;  %2970 = vmatpush3.bf16.msra.mxu1 (!%p1894_p7), %v2580_v7  ;;  %v2586_v14 = vpack.c.bf16 (!%p1894_p7), %v310_v12, %v309_v11  ;;  %v294_v16 = vld [vmem:[%s3559_s1 + $0x28] sm:$0xff] (!%p1894_p7)  ;;  %v312_v18 = vld [vmem:[%s3559_s1 + $0xb8] sm:$0xff] (!%p1894_p7)  ;;  %v295_v21 = vld [vmem:[%s3559_s1 + $0x30] sm:$0xff] (!%p1894_p7) }
  0x59   : > { %2583 = vmatprep.subr.bf16.mxu0 (!%p1894_p7), %v2582_v8  ;;  %2963 = vmatprep.subr.bf16.mxu1 (!%p1894_p7), %v2582_v8  ;;  %v2588_v19 = vpack.c.bf16 (!%p1894_p7), %v294_v16, %v293_v15  ;;  %v2590_v20 = vpack.c.bf16 (!%p1894_p7), %v312_v18, %v311_v17  ;;  %v296_v22 = vld [vmem:[%s3559_s1 + $0x38] sm:$0xff] (!%p1894_p7)  ;;  %v313_v23 = vld [vmem:[%s3559_s1 + $0xc0] sm:$0xff] (!%p1894_p7)  ;;  %v314_v24 = vld [vmem:[%s3559_s1 + $0xc8] sm:$0xff] (!%p1894_p7) }
  0x5a   : > { %v258_v25 = vld [vmem:[%s3554_s28 + $0x8] sm:$0xff] (!%p1894_p7)  ;;  %v2592_v27 = vpack.c.bf16 (!%p1894_p7), %v296_v22, %v295_v21  ;;  %v2594_v28 = vpack.c.bf16 (!%p1894_p7), %v314_v24, %v313_v23  ;;  %v297_v29 = vld [vmem:[%s3559_s1 + $0x40] sm:$0xff] (!%p1894_p7)  ;;  %v315_v31 = vld [vmem:[%s3559_s1 + $0xd0] sm:$0xff] (!%p1894_p7) }
  0x5b   : > { %385 = vmatprep.mubr.f32.mxu0 (!%p1894_p7), %v258_v25  ;;  %v274_v26 = vld [vmem:[%s3554_s28 + $0x88] sm:$0xff] (!%p1894_p7)  ;;  %v316_v32 = vld [vmem:[%s3559_s1 + $0xd8] sm:$0xff] (!%p1894_p7)  ;;  %v299_v35 = vld [vmem:[%s3559_s1 + $0x50] sm:$0xff] (!%p1894_p7) }
  0x5c   : > { %2585 = vmatpush3.bf16.msra.mxu0 %v2584_v13  ;;  %2971 = vmatpush3.bf16.msra.mxu1 %v2584_v13  ;;  %v298_v30 = vld [vmem:[%s3559_s1 + $0x48] sm:$0xff]  ;;  %v2598_v34 = vpack.c.bf16 %v316_v32, %v315_v31  ;;  %v300_v36 = vld [vmem:[%s3559_s1 + $0x58] sm:$0xff]  ;;  %v317_v37 = vld [vmem:[%s3559_s1 + $0xe0] sm:$0xff] }
  0x5d   : > { %2587 = vmatprep.subr.bf16.mxu0 %v2586_v14  ;;  %2964 = vmatprep.subr.bf16.mxu1 %v2586_v14  ;;  %v2596_v33 = vpack.c.bf16 %v298_v30, %v297_v29  ;;  %v318_v38 = vld [vmem:[%s3559_s1 + $0xe8] sm:$0xff]  ;;  %v2600_v39 = vpack.c.bf16 %v300_v36, %v299_v35  ;;  %v301_v41 = vld [vmem:[%s3559_s1 + $0x60] sm:$0xff]  ;;  %v319_v43 = vld [vmem:[%s3559_s1 + $0xf0] sm:$0xff] }
  0x5e   : > { %425 = vmatprep.mubr.f32.mxu1 %v274_v26  ;;  %v2602_v40 = vpack.c.bf16 %v318_v38, %v317_v37  ;;  %v302_v42 = vld [vmem:[%s3559_s1 + $0x68] sm:$0xff]  ;;  %v320_v44 = vld [vmem:[%s3559_s1 + $0xf8] sm:$0xff]  ;;  %v303_v47 = vld [vmem:[%s3559_s1 + $0x70] sm:$0xff] }
  0x5f   : > { %v2604_v45 = vpack.c.bf16 %v302_v42, %v301_v41  ;;  %v2606_v46 = vpack.c.bf16 %v320_v44, %v319_v43  ;;  %v304_v48 = vld [vmem:[%s3559_s1 + $0x78] sm:$0xff]  ;;  %v257_v50 = vld [vmem:[%s3554_s28] sm:$0xff]  ;;  %v259_v54 = vld [vmem:[%s3554_s28 + $0x10] sm:$0xff]  ;;  %s3342_s1 = smov 96  }
  0x60   : > { %2589 = vmatpush3.bf16.msra.mxu0 %v2588_v19  ;;  %2972 = vmatpush3.bf16.msra.mxu1 %v2588_v19  ;;  %v2608_v49 = vpack.c.bf16 %v304_v48, %v303_v47  ;;  %v273_v51 = vld [vmem:[%s3554_s28 + $0x80] sm:$0xff]  ;;  %v260_v52 = vld [vmem:[%s3554_s28 + $0x18] sm:$0xff]  ;;  %v275_v55 = vld [vmem:[%s3554_s28 + $0x90] sm:$0xff] }
  0x61   : > { %2591 = vmatprep.subr.bf16.mxu0 %v2590_v20  ;;  %2965 = vmatprep.subr.bf16.mxu1 %v2590_v20  ;;  %v276_v53 = vld [vmem:[%s3554_s28 + $0x98] sm:$0xff]  ;;  %v262_v56 = vld [vmem:[%s3554_s28 + $0x28] sm:$0xff]  ;;  %v261_v58 = vld [vmem:[%s3554_s28 + $0x20] sm:$0xff] }
  0x62   : > { %v278_v57 = vld [vmem:[%s3554_s28 + $0xa8] sm:$0xff]  ;;  %v277_v59 = vld [vmem:[%s3554_s28 + $0xa0] sm:$0xff]  ;;  %v264_v60 = vld [vmem:[%s3554_s28 + $0x38] sm:$0xff] }
  0x63   : > { %v280_v61 = vld [vmem:[%s3554_s28 + $0xb8] sm:$0xff]  ;;  %v263_v62 = vld [vmem:[%s3554_s28 + $0x30] sm:$0xff]  ;;  %v266_v0 = vld [vmem:[%s3554_s28 + $0x48] sm:$0xff] }
  0x64   : > { %2593 = vmatpush3.bf16.msra.mxu0 %v2592_v27  ;;  %2973 = vmatpush3.bf16.msra.mxu1 %v2592_v27  ;;  %v279_v63 = vld [vmem:[%s3554_s28 + $0xb0] sm:$0xff]  ;;  %v282_v1 = vld [vmem:[%s3554_s28 + $0xc8] sm:$0xff]  ;;  %v265_v2 = vld [vmem:[%s3554_s28 + $0x40] sm:$0xff] }
  0x65   : > { %2595 = vmatprep.subr.bf16.mxu0 %v2594_v28  ;;  %2966 = vmatprep.subr.bf16.mxu1 %v2594_v28  ;;  %v281_v3 = vld [vmem:[%s3554_s28 + $0xc0] sm:$0xff]  ;;  %v268_v4 = vld [vmem:[%s3554_s28 + $0x58] sm:$0xff]  ;;  %v267_v6 = vld [vmem:[%s3554_s28 + $0x50] sm:$0xff] }
  0x66   : > { %v284_v5 = vld [vmem:[%s3554_s28 + $0xd8] sm:$0xff]  ;;  %v283_v7 = vld [vmem:[%s3554_s28 + $0xd0] sm:$0xff]  ;;  %v270_v8 = vld [vmem:[%s3554_s28 + $0x68] sm:$0xff] }
  0x67   : > { %v286_v9 = vld [vmem:[%s3554_s28 + $0xe8] sm:$0xff]  ;;  %v269_v10 = vld [vmem:[%s3554_s28 + $0x60] sm:$0xff]  ;;  %v272_v12 = vld [vmem:[%s3554_s28 + $0x78] sm:$0xff] }
  0x68   : > { %2597 = vmatpush3.bf16.msra.mxu0 %v2596_v33  ;;  %2974 = vmatpush3.bf16.msra.mxu1 %v2596_v33  ;;  %v285_v11 = vld [vmem:[%s3554_s28 + $0xe0] sm:$0xff]  ;;  %v288_v13 = vld [vmem:[%s3554_s28 + $0xf8] sm:$0xff]  ;;  %v271_v14 = vld [vmem:[%s3554_s28 + $0x70] sm:$0xff] }
  0x69   : > { %2599 = vmatprep.subr.bf16.mxu0 %v2598_v34  ;;  %2967 = vmatprep.subr.bf16.mxu1 %v2598_v34  ;;  %v287_v15 = vld [vmem:[%s3554_s28 + $0xf0] sm:$0xff] }
  0x6c   : > { %2601 = vmatpush3.bf16.msra.mxu0 %v2600_v39  ;;  %2975 = vmatpush3.bf16.msra.mxu1 %v2600_v39 }
  0x6d   : > { %2603 = vmatprep.subr.bf16.mxu0 %v2602_v40  ;;  %2968 = vmatprep.subr.bf16.mxu1 %v2602_v40 }
  0x70   : > { %2605 = vmatpush3.bf16.msra.mxu0 %v2604_v45  ;;  %2976 = vmatpush3.bf16.msra.mxu1 %v2604_v45 }
  0x71   : > { %2607 = vmatprep.subr.bf16.mxu0 %v2606_v46  ;;  %2969 = vmatprep.subr.bf16.mxu1 %v2606_v46 }
  0x74   : > { %2609 = vmatpush3.bf16.msra.mxu0 %v2608_v49  ;;  %2977 = vmatpush3.bf16.msra.mxu1 %v2608_v49 }
  0x77   : > { %386 = vmatmul.mubr.f32.vlgmr.msra.gmra.mrb[0].mxu0 %v257_v50  ;;  %426 = vmatmul.mubr.f32.vlgmr.msra.gmra.mrb[0].mxu1 %v273_v51 }
  0x78   : > { %390 = vmatprep.mubr.f32.mxu0 %v260_v52  ;;  %430 = vmatprep.mubr.f32.mxu1 %v276_v53 }
  0x7b   : > { %391 = vmatmul.mubr.f32.gmra.mrb[2].mxu0 %v259_v54  ;;  %431 = vmatmul.mubr.f32.gmra.mrb[2].mxu1 %v275_v55 }
  0x7c   : > { %395 = vmatprep.mubr.f32.mxu0 %v262_v56  ;;  %435 = vmatprep.mubr.f32.mxu1 %v278_v57 }
  0x7f   : > { %396 = vmatmul.mubr.f32.gmra.mrb[4].mxu0 %v261_v58  ;;  %436 = vmatmul.mubr.f32.gmra.mrb[4].mxu1 %v277_v59 }
  0x80   : > { %400 = vmatprep.mubr.f32.mxu0 %v264_v60  ;;  %440 = vmatprep.mubr.f32.mxu1 %v280_v61 }
  0x83   : > { %401 = vmatmul.mubr.f32.gmra.mrb[6].mxu0 %v263_v62  ;;  %441 = vmatmul.mubr.f32.gmra.mrb[6].mxu1 %v279_v63 }
  0x84   : > { %405 = vmatprep.mubr.f32.mxu0 %v266_v0  ;;  %445 = vmatprep.mubr.f32.mxu1 %v282_v1 }
  0x87   : > { %406 = vmatmul.mubr.f32.gmra.mrb[8].mxu0 %v265_v2  ;;  %446 = vmatmul.mubr.f32.gmra.mrb[8].mxu1 %v281_v3 }
  0x88   : > { %410 = vmatprep.mubr.f32.mxu0 %v268_v4  ;;  %450 = vmatprep.mubr.f32.mxu1 %v284_v5 }
  0x8b   : > { %411 = vmatmul.mubr.f32.gmra.mrb[10].mxu0 %v267_v6  ;;  %451 = vmatmul.mubr.f32.gmra.mrb[10].mxu1 %v283_v7 }
  0x8c   : > { %415 = vmatprep.mubr.f32.mxu0 %v270_v8  ;;  %455 = vmatprep.mubr.f32.mxu1 %v286_v9 }
  0x8f   : > { %416 = vmatmul.mubr.f32.gmra.mrb[12].mxu0 %v269_v10  ;;  %456 = vmatmul.mubr.f32.gmra.mrb[12].mxu1 %v285_v11 }
  0x90   : > { %420 = vmatprep.mubr.f32.mxu0 %v272_v12  ;;  %460 = vmatprep.mubr.f32.mxu1 %v288_v13 }
  0x93   : > { %421 = vmatmul.mubr.f32.gmra.mrb[14].mxu0 %v271_v14  ;;  %461 = vmatmul.mubr.f32.gmra.mrb[14].mxu1 %v287_v15 }
 0x14a   : > { %v2022_v16 = vpop.f32.mrb[0].mxu0  ;;  %v2046_v17 = vpop.f32.mrb[0].mxu1 }
 0x14b   : > { %v2023_v18 = vpop.f32.mrb[1].mxu0  ;;  %v2047_v19 = vpop.f32.mrb[1].mxu1 }
 0x14c   : > { %v2024_v20 = vadd.f32 %v2023_v18, %v2022_v16  ;;  %v2048_v21 = vadd.f32 %v2047_v19, %v2046_v17 }
 0x14e   : > { %467 = vst.msk [vmem:[#allocation2] sm:$0xff] %vm466_vm0, %v2024_v20  ;;  %475 = vst.msk [vmem:[#allocation2 + $0x40] sm:$0xff] %vm466_vm0, %v2048_v21  ;;  %v2025_v22 = vpop.f32.mrb[2].mxu0  ;;  %v2049_v23 = vpop.f32.mrb[2].mxu1  ;;  %499 = vrot.lane.b32.xlu0 %v2024_v20, %s3342_s1 }
 0x14f   : > { %v2026_v24 = vpop.f32.mrb[3].mxu0  ;;  %v2050_v25 = vpop.f32.mrb[3].mxu1 }
 0x150   : > { %v2027_v26 = vadd.f32 %v2026_v24, %v2025_v22  ;;  %v2051_v27 = vadd.f32 %v2050_v25, %v2049_v23 }
 0x152   : > { %468 = vst.msk [vmem:[#allocation2 + $0x8] sm:$0xff] %vm466_vm0, %v2027_v26  ;;  %476 = vst.msk [vmem:[#allocation2 + $0x48] sm:$0xff] %vm466_vm0, %v2051_v27  ;;  %517 = vrot.lane.b32.xlu1 %v2051_v27, %s3342_s1  ;;  %v2028_v28 = vpop.f32.mrb[4].mxu0  ;;  %515 = vrot.lane.b32.xlu0 %v2048_v21, %s3342_s1  ;;  %v2052_v29 = vpop.f32.mrb[4].mxu1 }
 0x153   : > { %v2029_v30 = vpop.f32.mrb[5].mxu0  ;;  %v2053_v31 = vpop.f32.mrb[5].mxu1 }
 0x154   : > { %v2030_v32 = vadd.f32 %v2029_v30, %v2028_v28  ;;  %v2054_v33 = vadd.f32 %v2053_v31, %v2052_v29 }
 0x156   : > { %469 = vst.msk [vmem:[#allocation2 + $0x10] sm:$0xff] %vm466_vm0, %v2030_v32  ;;  %v2031_v34 = vpop.f32.mrb[6].mxu0  ;;  %477 = vst.msk [vmem:[#allocation2 + $0x50] sm:$0xff] %vm466_vm0, %v2054_v33  ;;  %503 = vrot.lane.b32.xlu1 %v2030_v32, %s3342_s1  ;;  %501 = vrot.lane.b32.xlu0 %v2027_v26, %s3342_s1  ;;  %v2055_v35 = vpop.f32.mrb[6].mxu1 }
 0x157   : > { %v2032_v36 = vpop.f32.mrb[7].mxu0  ;;  %v2056_v37 = vpop.f32.mrb[7].mxu1 }
 0x158   : > { %v2033_v38 = vadd.f32 %v2032_v36, %v2031_v34  ;;  %v2057_v39 = vadd.f32 %v2056_v37, %v2055_v35 }
 0x15a   : > { %470 = vst.msk [vmem:[#allocation2 + $0x18] sm:$0xff] %vm466_vm0, %v2033_v38  ;;  %v2034_v40 = vpop.f32.mrb[8].mxu0  ;;  %478 = vst.msk [vmem:[#allocation2 + $0x58] sm:$0xff] %vm466_vm0, %v2057_v39  ;;  %505 = vrot.lane.b32.xlu1 %v2033_v38, %s3342_s1  ;;  %519 = vrot.lane.b32.xlu0 %v2054_v33, %s3342_s1  ;;  %v2058_v41 = vpop.f32.mrb[8].mxu1 }
 0x15b   : > { %v2035_v42 = vpop.f32.mrb[9].mxu0  ;;  %v2059_v43 = vpop.f32.mrb[9].mxu1 }
 0x15c   : > { %v2036_v44 = vadd.f32 %v2035_v42, %v2034_v40  ;;  %v2060_v45 = vadd.f32 %v2059_v43, %v2058_v41 }
 0x15e   : > { %471 = vst.msk [vmem:[#allocation2 + $0x20] sm:$0xff] %vm466_vm0, %v2036_v44  ;;  %v2037_v46 = vpop.f32.mrb[10].mxu0  ;;  %479 = vst.msk [vmem:[#allocation2 + $0x60] sm:$0xff] %vm466_vm0, %v2060_v45  ;;  %521 = vrot.lane.b32.xlu1 %v2057_v39, %s3342_s1  ;;  %507 = vrot.lane.b32.xlu0 %v2036_v44, %s3342_s1  ;;  %v2061_v47 = vpop.f32.mrb[10].mxu1 }
 0x15f   : > { %v2038_v48 = vpop.f32.mrb[11].mxu0  ;;  %v2062_v49 = vpop.f32.mrb[11].mxu1 }
 0x160   : > { %v2039_v50 = vadd.f32 %v2038_v48, %v2037_v46  ;;  %v2063_v51 = vadd.f32 %v2062_v49, %v2061_v47 }
 0x162   : > { %472 = vst.msk [vmem:[#allocation2 + $0x28] sm:$0xff] %vm466_vm0, %v2039_v50  ;;  %v2040_v52 = vpop.f32.mrb[12].mxu0  ;;  %480 = vst.msk [vmem:[#allocation2 + $0x68] sm:$0xff] %vm466_vm0, %v2063_v51  ;;  %509 = vrot.lane.b32.xlu1 %v2039_v50, %s3342_s1  ;;  %523 = vrot.lane.b32.xlu0 %v2060_v45, %s3342_s1  ;;  %v2064_v53 = vpop.f32.mrb[12].mxu1 }
 0x163   : > { %v2041_v54 = vpop.f32.mrb[13].mxu0  ;;  %v2065_v55 = vpop.f32.mrb[13].mxu1 }
 0x164   : > { %v2042_v56 = vadd.f32 %v2041_v54, %v2040_v52  ;;  %v2066_v57 = vadd.f32 %v2065_v55, %v2064_v53 }
 0x166   : > { %473 = vst.msk [vmem:[#allocation2 + $0x30] sm:$0xff] %vm466_vm0, %v2042_v56  ;;  %v2043_v58 = vpop.f32.mrb[14].mxu0  ;;  %481 = vst.msk [vmem:[#allocation2 + $0x70] sm:$0xff] %vm466_vm0, %v2066_v57  ;;  %525 = vrot.lane.b32.xlu1 %v2063_v51, %s3342_s1  ;;  %511 = vrot.lane.b32.xlu0 %v2042_v56, %s3342_s1  ;;  %v2067_v59 = vpop.f32.mrb[14].mxu1 }
 0x167   : > { %v2044_v60 = vpop.f32.mrb[15].mxu0  ;;  %v2068_v61 = vpop.f32.mrb[15].mxu1 }
 0x168   : > { %v2045_v62 = vadd.f32 %v2044_v60, %v2043_v58  ;;  %v2069_v63 = vadd.f32 %v2068_v61, %v2067_v59 }
 0x16a   : > { %474 = vst.msk [vmem:[#allocation2 + $0x38] sm:$0xff] %vm466_vm0, %v2045_v62  ;;  %482 = vst.msk [vmem:[#allocation2 + $0x78] sm:$0xff] %vm466_vm0, %v2069_v63  ;;  %513 = vrot.lane.b32.xlu1 %v2045_v62, %s3342_s1  ;;  %527 = vrot.lane.b32.xlu0 %v2066_v57, %s3342_s1 }
 0x16e   : > { %529 = vrot.lane.b32.xlu1 %v2069_v63, %s3342_s1 }
 0x1c0   : > { %v500_v0 = vpop.permute.xlu0 %499 }
 0x1c1   : > { %547 = vst.msk [vmem:[#allocation3] sm:$0xff] %vm466_vm0, %v500_v0 }
 0x1c4   : > { %v518_v1 = vpop.permute.xlu1 %517  ;;  %v516_v2 = vpop.permute.xlu0 %515 }
 0x1c5   : > { %556 = vst.msk [vmem:[#allocation3 + $0x48] sm:$0xff] %vm466_vm0, %v518_v1  ;;  %555 = vst.msk [vmem:[#allocation3 + $0x40] sm:$0xff] %vm466_vm0, %v516_v2 }
 0x1c8   : > { %v504_v3 = vpop.permute.xlu1 %503  ;;  %v502_v4 = vpop.permute.xlu0 %501 }
 0x1c9   : > { %549 = vst.msk [vmem:[#allocation3 + $0x10] sm:$0xff] %vm466_vm0, %v504_v3  ;;  %548 = vst.msk [vmem:[#allocation3 + $0x8] sm:$0xff] %vm466_vm0, %v502_v4 }
 0x1cc   : > { %v506_v5 = vpop.permute.xlu1 %505  ;;  %v520_v6 = vpop.permute.xlu0 %519 }
 0x1cd   : > { %550 = vst.msk [vmem:[#allocation3 + $0x18] sm:$0xff] %vm466_vm0, %v506_v5  ;;  %557 = vst.msk [vmem:[#allocation3 + $0x50] sm:$0xff] %vm466_vm0, %v520_v6 }
 0x1d0   : > { %v522_v7 = vpop.permute.xlu1 %521  ;;  %v508_v8 = vpop.permute.xlu0 %507 }
 0x1d1   : > { %558 = vst.msk [vmem:[#allocation3 + $0x58] sm:$0xff] %vm466_vm0, %v522_v7  ;;  %551 = vst.msk [vmem:[#allocation3 + $0x20] sm:$0xff] %vm466_vm0, %v508_v8 }
 0x1d4   : > { %v510_v9 = vpop.permute.xlu1 %509  ;;  %v524_v10 = vpop.permute.xlu0 %523 }
 0x1d5   : > { %552 = vst.msk [vmem:[#allocation3 + $0x28] sm:$0xff] %vm466_vm0, %v510_v9  ;;  %559 = vst.msk [vmem:[#allocation3 + $0x60] sm:$0xff] %vm466_vm0, %v524_v10 }
 0x1d8   : > { %v526_v11 = vpop.permute.xlu1 %525  ;;  %v512_v12 = vpop.permute.xlu0 %511 }
 0x1d9   : > { %560 = vst.msk [vmem:[#allocation3 + $0x68] sm:$0xff] %vm466_vm0, %v526_v11  ;;  %553 = vst.msk [vmem:[#allocation3 + $0x30] sm:$0xff] %vm466_vm0, %v512_v12 }
 0x1dc   : > { %v514_v13 = vpop.permute.xlu1 %513  ;;  %v528_v14 = vpop.permute.xlu0 %527 }
 0x1dd   : > { %554 = vst.msk [vmem:[#allocation3 + $0x38] sm:$0xff] %vm466_vm0, %v514_v13  ;;  %561 = vst.msk [vmem:[#allocation3 + $0x70] sm:$0xff] %vm466_vm0, %v528_v14 }
 0x1e0   : > { %v530_v15 = vpop.permute.xlu1 %529 }
 0x1e1   : > { %562 = vst.msk [vmem:[#allocation3 + $0x78] sm:$0xff] %vm466_vm0, %v530_v15 }
 0x1e2 PF: > { %v593_v16 = vld [vmem:[%s3538_s5 + $0x80] sm:$0xff]  ;;  %v594_v17 = vld [vmem:[%s3538_s5 + $0x88] sm:$0xff]  ;;  %s1895_s11 = sshll.u32 %s3313_s18, 5  ;;  %v595_v21 = vld [vmem:[%s3538_s5 + $0x90] sm:$0xff]  ;;  %vm726_vm1 = vcmask 261120   ;;  %s3344_s23 = smov 64  }
 0x1e3   : > { %v577_v18 = vld [vmem:[%s3538_s5] sm:$0xff]  ;;  %v2610_v19 = vpack.c.bf16 %v594_v17, %v593_v16  ;;  %v578_v20 = vld [vmem:[%s3538_s5 + $0x8] sm:$0xff]  ;;  %v596_v22 = vld [vmem:[%s3538_s5 + $0x98] sm:$0xff]  ;;  %s564_s8 = sshra.s32 %s1895_s11, 3  ;;  %s3345_s4 = smov 32   ;;  %vm1243_vm3 = vcmask 523520  }
 0x1e4   : > { %v2612_v23 = vpack.c.bf16 %v578_v20, %v577_v18  ;;  %v2614_v24 = vpack.c.bf16 %v596_v22, %v595_v21  ;;  %v579_v25 = vld [vmem:[%s3538_s5 + $0x10] sm:$0xff]  ;;  %v580_v26 = vld [vmem:[%s3538_s5 + $0x18] sm:$0xff]  ;;  %v597_v27 = vld [vmem:[%s3538_s5 + $0xa0] sm:$0xff]  ;;  %s1988_s15 = sshll.u32 %s564_s8, 4  ;;  %vm1490_vm4 = vcmask 785920   ;;  %s1981_s25 = sshll.u32 %s3321_s20, 5 }
 0x1e5   : > { %2611 = vmatprep.subr.bf16.mxu0 %v2610_v19  ;;  %v598_v28 = vld [vmem:[%s3538_s5 + $0xa8] sm:$0xff]  ;;  %v2616_v29 = vpack.c.bf16 %v580_v26, %v579_v25  ;;  %v581_v31 = vld [vmem:[%s3538_s5 + $0x20] sm:$0xff]  ;;  %v599_v33 = vld [vmem:[%s3538_s5 + $0xb0] sm:$0xff]  ;;  %s3692_s10 = scalar_lea.vmem %s3554_s28, %s1988_s15  ;;  %s1989_s28 = sshll.u32 %s3313_s18, 3  ;;  %vm1737_vm5 = vcmask 1048320  }
 0x1e6   : > { %2613 = vmatpush3.bf16.msra.mxu0 %v2612_v23  ;;  %v2618_v30 = vpack.c.bf16 %v598_v28, %v597_v27  ;;  %v582_v32 = vld [vmem:[%s3538_s5 + $0x28] sm:$0xff]  ;;  %v600_v34 = vld [vmem:[%s3538_s5 + $0xb8] sm:$0xff]  ;;  %v583_v37 = vld [vmem:[%s3538_s5 + $0x30] sm:$0xff]  ;;  %s1755_s7 = sadd.s32 %s3317_s19, %s1989_s28  ;;  %s1760_s11 = sshll.u32 %s3561_s22, 4  ;;  %s4181_s11 = int_to_ptr.vmem [resolvable:$true] %s1760_s11 }
 0x1e7   : > { %2615 = vmatprep.subr.bf16.mxu0 %v2614_v24  ;;  %v2620_v35 = vpack.c.bf16 %v582_v32, %v581_v31  ;;  %v2622_v36 = vpack.c.bf16 %v600_v34, %v599_v33  ;;  %v584_v38 = vld [vmem:[%s3538_s5 + $0x38] sm:$0xff]  ;;  %v601_v39 = vld [vmem:[%s3538_s5 + $0xc0] sm:$0xff]  ;;  %v602_v40 = vld [vmem:[%s3538_s5 + $0xc8] sm:$0xff]  ;;  %s1757_s29 = sadd.s32 %s1981_s25, %s1755_s7  ;;  %s4187_s18 = scalar_lea.sflag [#allocation6], %s239_s6 }
 0x1e8   : > { %v570_v41 = vld [vmem:[%s3692_s10 + $0x8] sm:$0xff]  ;;  %v2624_v42 = vpack.c.bf16 %v584_v38, %v583_v37  ;;  %v585_v43 = vld [vmem:[%s3538_s5 + $0x40] sm:$0xff]  ;;  %v603_v45 = vld [vmem:[%s3538_s5 + $0xd0] sm:$0xff]  ;;  %v2626_v46 = vpack.c.bf16 %v602_v40, %v601_v39  ;;  %s1982_s1 = sshll.u32 %s1757_s29, 7  ;;  %s3199_s19 = scalar_lea.vmem %s4181_s11, 512 }
 0x1e9   : > { %673 = vmatprep.mubr.f32.mxu0 %v570_v41  ;;  %v586_v44 = vld [vmem:[%s3538_s5 + $0x48] sm:$0xff]  ;;  %v604_v47 = vld [vmem:[%s3538_s5 + $0xd8] sm:$0xff]  ;;  %v694_v48 = vld [vmem:[#allocation2] sm:$0xff]  ;;  %p3200_p4 = scmp.ne.s32.totalorder %s4181_s11, %s3199_s19  ;;  %p4286_p1 = scmp.ne.s32.totalorder %s4278_s26, 0 }
 0x1ea   : > { %2617 = vmatpush3.bf16.msra.mxu0 %v2616_v29  ;;  %v695_v49 = vld [vmem:[#allocation2 + $0x8] sm:$0xff]  ;;  %vm3707_vm2 = vmpackc.low %vm726_vm1, %vm726_vm1  ;;  %v696_v52 = vld [vmem:[#allocation2 + $0x10] sm:$0xff]  ;;  %v2628_v55 = vpack.c.bf16 %v586_v44, %v585_v43  ;;  %v2630_v56 = vpack.c.bf16 %v604_v47, %v603_v45  ;;  %s3346_s20 = smov [#allocation7]  }
 0x1eb   : > { %2619 = vmatprep.subr.bf16.mxu0 %v2618_v30  ;;  %v3703_v50 = vpack.c.bf16 %v695_v49, %v694_v48  ;;  %v697_v53 = vld [vmem:[#allocation2 + $0x18] sm:$0xff]  ;;  %v587_v57 = vld [vmem:[%s3538_s5 + $0x50] sm:$0xff]  ;;  %v605_v59 = vld [vmem:[%s3538_s5 + $0xe0] sm:$0xff]  ;;  %p3201_p2 = pnand %p3200_p4, %p4286_p1 }
 0x1ec   : > { %v3711_v54 = vpack.c.bf16 %v697_v53, %v696_v52  ;;  %v588_v58 = vld [vmem:[%s3538_s5 + $0x58] sm:$0xff]  ;;  %v606_v60 = vld [vmem:[%s3538_s5 + $0xe8] sm:$0xff]  ;;  %v698_v61 = vld [vmem:[#allocation2 + $0x20] sm:$0xff] }
 0x1ed   : > { %2644 = vmatprep.subr.msk.bf16.mxu1 %vm3707_vm2, %v3703_v50  ;;  %v699_v62 = vld [vmem:[#allocation2 + $0x28] sm:$0xff]  ;;  %v2632_v63 = vpack.c.bf16 %v588_v58, %v587_v57  ;;  %v2634_v0 = vpack.c.bf16 %v606_v60, %v605_v59  ;;  %v589_v1 = vld [vmem:[%s3538_s5 + $0x60] sm:$0xff]  ;;  %v607_v3 = vld [vmem:[%s3538_s5 + $0xf0] sm:$0xff]  ;;  %p3202_p8 = pneg %p3201_p2 }
 0x1ee   : > { %2621 = vmatpush3.bf16.msra.mxu0 %v2620_v35  ;;  %2647 = vmatpush3.bf16.xpose.msk.msra.mxu1 %vm3707_vm2, %v3703_v50  ;;  %v590_v2 = vld [vmem:[%s3538_s5 + $0x68] sm:$0xff]  ;;  %v608_v4 = vld [vmem:[%s3538_s5 + $0xf8] sm:$0xff]  ;;  %v3730_v5 = vpack.c.bf16 %v699_v62, %v698_v61  ;;  %v591_v8 = vld [vmem:[%s3538_s5 + $0x70] sm:$0xff] }
 0x1ef   : > { %2623 = vmatprep.subr.bf16.mxu0 %v2622_v36  ;;  %2650 = vmatprep.subr.msk.bf16.mxu1 %vm3707_vm2, %v3711_v54  ;;  %v2636_v6 = vpack.c.bf16 %v590_v2, %v589_v1  ;;  %v2638_v7 = vpack.c.bf16 %v608_v4, %v607_v3  ;;  %v592_v9 = vld [vmem:[%s3538_s5 + $0x78] sm:$0xff]  ;;  %v700_v10 = vld [vmem:[#allocation2 + $0x30] sm:$0xff]  ;;  %v569_v14 = vld [vmem:[%s3692_s10] sm:$0xff]  ;;  %s3343_s5 = smov 96  }
 0x1f0   : > { %v701_v11 = vld [vmem:[#allocation2 + $0x38] sm:$0xff]  ;;  %v2640_v12 = vpack.c.bf16 %v592_v9, %v591_v8  ;;  %v702_v16 = vld [vmem:[#allocation2 + $0x40] sm:$0xff]  ;;  %v703_v17 = vld [vmem:[#allocation2 + $0x48] sm:$0xff] }
 0x1f1   : > { %v3740_v13 = vpack.c.bf16 %v701_v11, %v700_v10  ;;  %v572_v15 = vld [vmem:[%s3692_s10 + $0x18] sm:$0xff]  ;;  %v571_v18 = vld [vmem:[%s3692_s10 + $0x10] sm:$0xff]  ;;  %v574_v19 = vld [vmem:[%s3692_s10 + $0x28] sm:$0xff]  ;;  %v3752_v20 = vpack.c.bf16 %v703_v17, %v702_v16 }
 0x1f2   : > { %2625 = vmatpush3.bf16.msra.mxu0 %v2624_v42  ;;  %v573_v21 = vld [vmem:[%s3692_s10 + $0x20] sm:$0xff]  ;;  %v576_v22 = vld [vmem:[%s3692_s10 + $0x38] sm:$0xff]  ;;  %v704_v23 = vld [vmem:[#allocation2 + $0x50] sm:$0xff] }
 0x1f3   : > { %2627 = vmatprep.subr.bf16.mxu0 %v2626_v46  ;;  %v705_v24 = vld [vmem:[#allocation2 + $0x58] sm:$0xff]  ;;  %v575_v25 = vld [vmem:[%s3692_s10 + $0x30] sm:$0xff]  ;;  %v706_v27 = vld [vmem:[#allocation2 + $0x60] sm:$0xff]  ;;  %s4179_s10 = scalar_lea.hbm %s4263_s3, %s1982_s1 }
 0x1f4   : > { %v3763_v26 = vpack.c.bf16 %v705_v24, %v704_v23  ;;  %v707_v28 = vld [vmem:[#allocation2 + $0x68] sm:$0xff]  ;;  %v708_v30 = vld [vmem:[#allocation2 + $0x70] sm:$0xff]  ;;  %v709_v31 = vld [vmem:[#allocation2 + $0x78] sm:$0xff] }
 0x1f5   : > { %v3771_v29 = vpack.c.bf16 %v707_v28, %v706_v27  ;;  %v3782_v32 = vpack.c.bf16 %v709_v31, %v708_v30  ;;  %v710_v45 = vld [vmem:[#allocation3] sm:$0xff]  ;;  %v711_v46 = vld [vmem:[#allocation3 + $0x8] sm:$0xff]  ;;  %v712_v47 = vld [vmem:[#allocation3 + $0x10] sm:$0xff] }
 0x1f6   : > { %2629 = vmatpush3.bf16.msra.mxu0 %v2628_v55  ;;  %2653 = vmatpush3.bf16.xpose.msk.msra.mxu1 %vm3707_vm2, %v3711_v54  ;;  %v3806_v48 = vpack.c.bf16 %v711_v46, %v710_v45  ;;  %v713_v49 = vld [vmem:[#allocation3 + $0x18] sm:$0xff]  ;;  %v714_v53 = vld [vmem:[#allocation3 + $0x20] sm:$0xff]  ;;  %v715_v55 = vld [vmem:[#allocation3 + $0x28] sm:$0xff] }
 0x1f7   : > { %2631 = vmatprep.subr.bf16.mxu0 %v2630_v56  ;;  %2656 = vmatprep.subr.msk.bf16.mxu1 %vm3707_vm2, %v3730_v5  ;;  %v3808_v52 = vpack.c.bf16 %v713_v49, %v712_v47  ;;  %v3815_v56 = vpack.c.bf16 %v715_v55, %v714_v53  ;;  %v716_v57 = vld [vmem:[#allocation3 + $0x30] sm:$0xff]  ;;  %v717_v58 = vld [vmem:[#allocation3 + $0x38] sm:$0xff]  ;;  %v718_v60 = vld [vmem:[#allocation3 + $0x40] sm:$0xff] }
 0x1f8   : > { %v3821_v59 = vpack.c.bf16 %v717_v58, %v716_v57  ;;  %v719_v61 = vld [vmem:[#allocation3 + $0x48] sm:$0xff]  ;;  %v720_v3 = vld [vmem:[#allocation3 + $0x50] sm:$0xff]  ;;  %v721_v4 = vld [vmem:[#allocation3 + $0x58] sm:$0xff] }
 0x1f9   : > { %v3827_v62 = vpack.c.bf16 %v719_v61, %v718_v60  ;;  %v723_v8 = vld [vmem:[#allocation3 + $0x68] sm:$0xff]  ;;  %v724_v10 = vld [vmem:[#allocation3 + $0x70] sm:$0xff]  ;;  %v725_v11 = vld [vmem:[#allocation3 + $0x78] sm:$0xff] }
 0x1fa   : > { %2633 = vmatpush3.bf16.msra.mxu0 %v2632_v63 }
 0x1fb   : > { %2635 = vmatprep.subr.bf16.mxu0 %v2634_v0 }
 0x1fe   : > { %2637 = vmatpush3.bf16.msra.mxu0 %v2636_v6  ;;  %2659 = vmatpush3.bf16.xpose.msk.msra.mxu1 %vm3707_vm2, %v3730_v5  ;;  %v3836_v6 = vpack.c.bf16 %v721_v4, %v720_v3 }
 0x1ff   : > { %2639 = vmatprep.subr.bf16.mxu0 %v2638_v7  ;;  %2662 = vmatprep.subr.msk.bf16.mxu1 %vm3707_vm2, %v3740_v13  ;;  %v722_v7 = vld [vmem:[#allocation3 + $0x60] sm:$0xff] }
 0x200   : > { %v3842_v9 = vpack.c.bf16 %v723_v8, %v722_v7 }
 0x202   : > { %2641 = vmatpush3.bf16.msra.mxu0 %v2640_v12  ;;  %v3848_v12 = vpack.c.bf16 %v725_v11, %v724_v10 }
 0x203   : > { %2691 = vmatprep.subr.bf16.mxu0 %v3806_v48 }
 0x205   : > { %674 = vmatmul.mubr.f32.vlgmr.msra.gmra.mrb[0].mxu0 %v569_v14 }
 0x206   : > { %678 = vmatprep.mubr.f32.mxu0 %v572_v15  ;;  %2665 = vmatpush3.bf16.xpose.msk.msra.mxu1 %vm3707_vm2, %v3740_v13 }
 0x207   : > { %2668 = vmatprep.subr.msk.bf16.mxu1 %vm3707_vm2, %v3752_v20  ;;  %2693 = vmatpush3.bf16.msra.mxu0 %v3806_v48 }
 0x208   : > { %2695 = vmatprep.subr.bf16.mxu0 %v3808_v52 }
 0x209   : > { %679 = vmatmul.mubr.f32.gmra.mrb[2].mxu0 %v571_v18 }
 0x20a   : > { %683 = vmatprep.mubr.f32.mxu0 %v574_v19 }
 0x20b   : > { %2697 = vmatpush3.bf16.msra.mxu0 %v3808_v52 }
 0x20c   : > { %2699 = vmatprep.subr.bf16.mxu0 %v3815_v56 }
 0x20d   : > { %684 = vmatmul.mubr.f32.gmra.mrb[4].mxu0 %v573_v21 }
 0x20e   : > { %688 = vmatprep.mubr.f32.mxu0 %v576_v22  ;;  %2671 = vmatpush3.bf16.xpose.msk.msra.mxu1 %vm3707_vm2, %v3752_v20 }
 0x20f   : > { %2674 = vmatprep.subr.msk.bf16.mxu1 %vm3707_vm2, %v3763_v26  ;;  %2701 = vmatpush3.bf16.msra.mxu0 %v3815_v56 }
 0x210   : > { %2703 = vmatprep.subr.bf16.mxu0 %v3821_v59 }
 0x211   : > { %689 = vmatmul.mubr.f32.gmra.mrb[6].mxu0 %v575_v25 }
 0x213   : > { %2705 = vmatpush3.bf16.msra.mxu0 %v3821_v59 }
 0x214   : > { %2707 = vmatprep.subr.bf16.mxu0 %v3827_v62 }
 0x216   : > { %2677 = vmatpush3.bf16.xpose.msk.msra.mxu1 %vm3707_vm2, %v3763_v26 }
 0x217   : > { %2680 = vmatprep.subr.msk.bf16.mxu1 %vm3707_vm2, %v3771_v29  ;;  %2709 = vmatpush3.bf16.msra.mxu0 %v3827_v62 }
 0x218   : > { %2711 = vmatprep.subr.bf16.mxu0 %v3836_v6 }
 0x21b   : > { %2713 = vmatpush3.bf16.msra.mxu0 %v3836_v6 }
 0x21c   : > { %2715 = vmatprep.subr.bf16.mxu0 %v3842_v9 }
 0x21e   : > { %2683 = vmatpush3.bf16.xpose.msk.msra.mxu1 %vm3707_vm2, %v3771_v29 }
 0x21f   : > { %2686 = vmatprep.subr.msk.bf16.mxu1 %vm3707_vm2, %v3782_v32  ;;  %2717 = vmatpush3.bf16.msra.mxu0 %v3842_v9 }
 0x220   : > { %2719 = vmatprep.subr.bf16.mxu0 %v3848_v12 }
 0x223   : > { %2721 = vmatpush3.bf16.msra.mxu0 %v3848_v12 }
 0x224   : > { %2724 = vmatprep.subr.msk.bf16.mxu0 %vm3707_vm2, %v3703_v50 }
 0x226   : > { %2689 = vmatpush3.bf16.xpose.msk.msra.mxu1 %vm3707_vm2, %v3782_v32 }
 0x227   : > { %2771 = vmatprep.subr.bf16.mxu1 %v3806_v48 }
 0x2d8   : > { %v2102_v33 = vpop.f32.mrb[0].mxu0 }
 0x2d9   : > { %v2103_v34 = vpop.f32.mrb[1].mxu0 }
 0x2da   : > { %v3790_v35 = vadd.f32 %v2103_v34, %v2102_v33 }
 0x2dc   : > { %v2105_v36 = vpop.f32.mrb[2].mxu0  ;;  %2306 = vmatprep.mubr.msk.f32.mxu1 %vm726_vm1, %v3790_v35 }
 0x2dd   : > { %v2106_v37 = vpop.f32.mrb[3].mxu0 }
 0x2de   : > { %v3794_v38 = vadd.f32 %v2106_v37, %v2105_v36 }
 0x2e0   : > { %2307 = vmatmul.mubr.msk.f32.vlgmr.msra.gmra.mrb[0].mxu1 %vm726_vm1, %v3794_v38  ;;  %v2108_v39 = vpop.f32.mrb[4].mxu0 }
 0x2e1   : > { %v2109_v40 = vpop.f32.mrb[5].mxu0  ;;  %2773 = vmatpush3.bf16.msra.mxu1 %v3806_v48 }
 0x2e2   : > { %v3798_v41 = vadd.f32 %v2109_v40, %v2108_v39  ;;  %2775 = vmatprep.subr.bf16.mxu1 %v3808_v52 }
 0x2e4   : > { %v2111_v42 = vpop.f32.mrb[6].mxu0  ;;  %2309 = vmatprep.mubr.msk.f32.mxu1 %vm726_vm1, %v3798_v41 }
 0x2e5   : > { %v2112_v43 = vpop.f32.mrb[7].mxu0  ;;  %2777 = vmatpush3.bf16.msra.mxu1 %v3808_v52 }
 0x2e6   : > { %v3802_v44 = vadd.f32 %v2112_v43, %v2111_v42  ;;  %2779 = vmatprep.subr.bf16.mxu1 %v3815_v56 }
 0x2e8   : > { %2310 = vmatmul.mubr.msk.f32.gmra.mrb[2].mxu1 %vm726_vm1, %v3802_v44 }
 0x2e9   : > { %2781 = vmatpush3.bf16.msra.mxu1 %v3815_v56 }
 0x2ea   : > { %2783 = vmatprep.subr.bf16.mxu1 %v3821_v59 }
 0x2ed   : > { %2785 = vmatpush3.bf16.msra.mxu1 %v3821_v59 }
 0x2ee   : > { %2787 = vmatprep.subr.bf16.mxu1 %v3827_v62 }
 0x2f1   : > { %2789 = vmatpush3.bf16.msra.mxu1 %v3827_v62 }
 0x2f2   : > { %2791 = vmatprep.subr.bf16.mxu1 %v3836_v6 }
 0x2f5   : > { %2793 = vmatpush3.bf16.msra.mxu1 %v3836_v6 }
 0x2f6   : > { %2795 = vmatprep.subr.bf16.mxu1 %v3842_v9 }
 0x2f9   : > { %2797 = vmatpush3.bf16.msra.mxu1 %v3842_v9 }
 0x2fa   : > { %2799 = vmatprep.subr.bf16.mxu1 %v3848_v12 }
 0x2fd   : > { %2801 = vmatpush3.bf16.msra.mxu1 %v3848_v12 }
 0x2fe   : > { %2804 = vmatprep.subr.msk.bf16.mxu1 %vm3707_vm2, %v3703_v50 }
 0x3b3   : > { %v2308_v63 = vpop.f32.mrb[0].mxu1 }
 0x3b4   : > { %v853_v0 = vpop.f32.mrb[1].mxu1 }
 0x3b5   : > { %872 = vmax.xlane.f32.xlu0 %v853_v0 }
 0x3b9   : > { %874 = vmax.xlane.f32.xlu0 %v2308_v63 }
 0x3bb   : > { %v2311_v1 = vpop.f32.mrb[2].mxu1 }
 0x3bc   : > { %878 = vmax.xlane.f32.xlu1 %v2311_v1  ;;  %v863_v2 = vpop.f32.mrb[3].mxu1 }
 0x3c0   : > { %876 = vmax.xlane.f32.xlu1 %v863_v2 }
 0x3cf   : > { %1001 = vrot.lane.b32.xlu0 %v3790_v35, %s3343_s5 }
 0x3d1   : > { %1003 = vrot.lane.b32.xlu1 %v3794_v38, %s3343_s5 }
 0x3d5   : > { %1005 = vrot.lane.b32.xlu1 %v3798_v41, %s3343_s5 }
 0x3d9   : > { %1007 = vrot.lane.b32.xlu1 %v3802_v44, %s3343_s5 }
 0x442   : > { %v873_v14 = vpop.xlane.xlu0 %872 }
 0x443   : > { %v880_v15 = vsub.f32 %v853_v0, %v873_v14 }
 0x445   : > { %v884_v16 = vmul.f32 1.442695, %v880_v15 }
 0x446   : > { %v875_v17 = vpop.xlane.xlu0 %874 }
 0x447   : > { %3105 = vpow2.f32 %v884_v16  ;;  %v881_v18 = vsub.f32 %v2308_v63, %v875_v17 }
 0x449   : > { %v886_v19 = vmul.f32 1.442695, %v881_v18  ;;  %v879_v21 = vpop.xlane.xlu1 %878 }
 0x44a   : > { %v883_v22 = vsub.f32 %v2311_v1, %v879_v21  ;;  %v1002_v34 = vpop.permute.xlu0 %1001 }
 0x44b   : > { %3107 = vpow2.f32 %v886_v19 }
 0x44c   : > { %v890_v25 = vmul.f32 1.442695, %v883_v22 }
 0x44d   : > { %v877_v23 = vpop.xlane.xlu1 %876 }
 0x44e   : > { %v882_v24 = vsub.f32 %v863_v2, %v877_v23 }
 0x450   : > { %v888_v27 = vmul.f32 1.442695, %v882_v24 }
 0x451   : > { %v3868_v28 = vpop.eup %3105  ;;  %v1004_v36 = vpop.permute.xlu1 %1003 }
 0x452   : > { %3109 = vpow2.f32 %v888_v27  ;;  %2344 = vmatprep.mubr.f32.mxu0 %v3868_v28 }
 0x453   : > { %3111 = vpow2.f32 %v890_v25 }
 0x455   : > { %v3871_v30 = vpop.eup %3107  ;;  %v1006_v37 = vpop.permute.xlu1 %1005 }
 0x456   : > { %2345 = vmatmul.mubr.f32.vlgmr.msra.gmra.mrb[8].mxu0 %v3871_v30 }
 0x457   : > { %2727 = vmatpush3.bf16.xpose.msk.msra.mxu0 %vm3707_vm2, %v3703_v50 }
 0x458   : > { %2730 = vmatprep.subr.msk.bf16.mxu0 %vm3707_vm2, %v3711_v54 }
 0x459   : > { %v1008_v39 = vpop.permute.xlu1 %1007 }
 0x45c   : > { %v3880_v31 = vpop.eup %3109 }
 0x45d   : > { %v3882_v33 = vpop.eup %3111  ;;  %2347 = vmatprep.mubr.f32.mxu0 %v3880_v31 }
 0x45e   : > { %2348 = vmatmul.mubr.f32.gmra.mrb[10].mxu0 %v3882_v33 }
 0x45f   : > { %2733 = vmatpush3.bf16.xpose.msk.msra.mxu0 %vm3707_vm2, %v3711_v54  ;;  %2382 = vmatprep.mubr.msk.f32.mxu0 %vm726_vm1, %v1002_v34 }
 0x460   : > { %2736 = vmatprep.subr.msk.bf16.mxu0 %vm3707_vm2, %v3730_v5 }
 0x467   : > { %2739 = vmatpush3.bf16.xpose.msk.msra.mxu0 %vm3707_vm2, %v3730_v5 }
 0x468   : > { %2742 = vmatprep.subr.msk.bf16.mxu0 %vm3707_vm2, %v3740_v13 }
 0x46f   : > { %2745 = vmatpush3.bf16.xpose.msk.msra.mxu0 %vm3707_vm2, %v3740_v13 }
 0x470   : > { %2748 = vmatprep.subr.msk.bf16.mxu0 %vm3707_vm2, %v3752_v20 }
 0x477   : > { %2751 = vmatpush3.bf16.xpose.msk.msra.mxu0 %vm3707_vm2, %v3752_v20 }
 0x478   : > { %2754 = vmatprep.subr.msk.bf16.mxu0 %vm3707_vm2, %v3763_v26 }
 0x47f   : > { %2757 = vmatpush3.bf16.xpose.msk.msra.mxu0 %vm3707_vm2, %v3763_v26 }
 0x480   : > { %2760 = vmatprep.subr.msk.bf16.mxu0 %vm3707_vm2, %v3771_v29 }
 0x487   : > { %2763 = vmatpush3.bf16.xpose.msk.msra.mxu0 %vm3707_vm2, %v3771_v29 }
 0x488   : > { %2766 = vmatprep.subr.msk.bf16.mxu0 %vm3707_vm2, %v3782_v32 }
 0x48f   : > { %2769 = vmatpush3.bf16.xpose.msk.msra.mxu0 %vm3707_vm2, %v3782_v32 }
 0x490   : > { %2851 = vmatprep.subr.bf16.mxu0 %v3806_v48 }
 0x496   : > { %2383 = vmatmul.mubr.msk.f32.vlgmr.msra.gmra.mrb[12].mxu0 %vm726_vm1, %v1004_v36 }
 0x497   : > { %2385 = vmatprep.mubr.msk.f32.mxu0 %vm726_vm1, %v1006_v37  ;;  %2853 = vmatpush3.bf16.msra.mxu0 %v3806_v48 }
 0x498   : > { %2855 = vmatprep.subr.bf16.mxu0 %v3808_v52 }
 0x49a   : > { %2386 = vmatmul.mubr.msk.f32.gmra.mrb[14].mxu0 %vm726_vm1, %v1008_v39 }
 0x49b   : > { %2857 = vmatpush3.bf16.msra.mxu0 %v3808_v52 }
 0x49c   : > { %2859 = vmatprep.subr.bf16.mxu0 %v3815_v56 }
 0x49f   : > { %2861 = vmatpush3.bf16.msra.mxu0 %v3815_v56 }
 0x4a0   : > { %2863 = vmatprep.subr.bf16.mxu0 %v3821_v59 }
 0x4a3   : > { %2865 = vmatpush3.bf16.msra.mxu0 %v3821_v59 }
 0x4a4   : > { %2867 = vmatprep.subr.bf16.mxu0 %v3827_v62 }
 0x4a7   : > { %2869 = vmatpush3.bf16.msra.mxu0 %v3827_v62 }
 0x4a8   : > { %2871 = vmatprep.subr.bf16.mxu0 %v3836_v6 }
 0x4ab   : > { %2873 = vmatpush3.bf16.msra.mxu0 %v3836_v6 }
 0x4ac   : > { %2875 = vmatprep.subr.bf16.mxu0 %v3842_v9 }
 0x4af   : > { %2877 = vmatpush3.bf16.msra.mxu0 %v3842_v9 }
 0x4b0   : > { %2879 = vmatprep.subr.bf16.mxu0 %v3848_v12 }
 0x4b3   : > { %2881 = vmatpush3.bf16.msra.mxu0 %v3848_v12 }
 0x4b4   : > { %2884 = vmatprep.subr.msk.bf16.mxu0 %vm3707_vm2, %v3703_v50 }
 0x529   : > { %v3948_v40 = vpop.f32.mrb[8].mxu0 }
 0x52a   : > { %v3950_v42 = vpop.f32.mrb[9].mxu0 }
 0x531   : > { %v3952_v43 = vpop.f32.mrb[10].mxu0 }
 0x532   : > { %v3954_v45 = vpop.f32.mrb[11].mxu0 }
 0x569   : > { %v2384_v46 = vpop.f32.mrb[12].mxu0 }
 0x56a   : > { %1104 = vmax.xlane.f32.xlu1 %v2384_v46  ;;  %v1083_v47 = vpop.f32.mrb[13].mxu0 }
 0x56b   : > { %1102 = vmax.xlane.f32.xlu0 %v1083_v47 }
 0x56d   : > { %v2387_v49 = vpop.f32.mrb[14].mxu0 }
 0x56e   : > { %v1093_v53 = vpop.f32.mrb[15].mxu0 }
 0x56f   : > { %1106 = vmax.xlane.f32.xlu0 %v1093_v53 }
 0x573   : > { %1108 = vmax.xlane.f32.xlu0 %v2387_v49 }
 0x57b   : > { %1250 = vrot.lane.b32.xlu1 %v3794_v38, %s3344_s23 }
 0x57f   : > { %1252 = vrot.lane.b32.xlu1 %v3798_v41, %s3344_s23 }
 0x583   : > { %1254 = vrot.lane.b32.xlu1 %v3802_v44, %s3344_s23 }
 0x589   : > { %1248 = vrot.lane.b32.xlu0 %v3790_v35, %s3344_s23 }
 0x5f7   : > { %v1105_v55 = vpop.xlane.xlu1 %1104 }
 0x5f8   : > { %v1111_v57 = vsub.f32 %v2384_v46, %v1105_v55  ;;  %v1103_v58 = vpop.xlane.xlu0 %1102 }
 0x5f9   : > { %v1110_v60 = vsub.f32 %v1083_v47, %v1103_v58 }
 0x5fa   : > { %v1116_v61 = vmul.f32 1.442695, %v1111_v57 }
 0x5fb   : > { %v1114_v63 = vmul.f32 1.442695, %v1110_v60  ;;  %v1251_v16 = vpop.permute.xlu1 %1250 }
 0x5fc   : > { %v1107_v0 = vpop.xlane.xlu0 %1106 }
 0x5fd   : > { %3113 = vpow2.f32 %v1114_v63  ;;  %v1112_v1 = vsub.f32 %v1093_v53, %v1107_v0 }
 0x5fe   : > { %3115 = vpow2.f32 %v1116_v61 }
 0x5ff   : > { %v1118_v2 = vmul.f32 1.442695, %v1112_v1  ;;  %v1253_v17 = vpop.permute.xlu1 %1252 }
 0x600   : > { %v1109_v3 = vpop.xlane.xlu0 %1108 }
 0x601   : > { %3117 = vpow2.f32 %v1118_v2  ;;  %v1113_v4 = vsub.f32 %v2387_v49, %v1109_v3 }
 0x603   : > { %v1120_v7 = vmul.f32 1.442695, %v1113_v4  ;;  %v1255_v18 = vpop.permute.xlu1 %1254 }
 0x604   : > { %v1249_v15 = vpop.permute.xlu0 %1248 }
 0x605   : > { %3119 = vpow2.f32 %v1120_v7 }
 0x607   : > { %v3964_v8 = vpop.eup %3113 }
 0x608   : > { %v3966_v10 = vpop.eup %3115  ;;  %2420 = vmatprep.mubr.f32.mxu1 %v3964_v8 }
 0x609   : > { %2421 = vmatmul.mubr.f32.vlgmr.msra.gmra.mrb[4].mxu1 %v3966_v10 }
 0x60a   : > { %2807 = vmatpush3.bf16.xpose.msk.msra.mxu1 %vm3707_vm2, %v3703_v50 }
 0x60b   : > { %v3973_v11 = vpop.eup %3117  ;;  %2810 = vmatprep.subr.msk.bf16.mxu1 %vm3707_vm2, %v3711_v54 }
 0x60c   : > { %2423 = vmatprep.mubr.f32.mxu1 %v3973_v11 }
 0x60f   : > { %v3979_v14 = vpop.eup %3119 }
 0x610   : > { %2424 = vmatmul.mubr.f32.gmra.mrb[6].mxu1 %v3979_v14 }
 0x611   : > { %2458 = vmatprep.mubr.msk.f32.mxu1 %vm726_vm1, %v1249_v15 }
 0x612   : > { %2813 = vmatpush3.bf16.xpose.msk.msra.mxu1 %vm3707_vm2, %v3711_v54 }
 0x613   : > { %2816 = vmatprep.subr.msk.bf16.mxu1 %vm3707_vm2, %v3730_v5 }
 0x61a   : > { %2819 = vmatpush3.bf16.xpose.msk.msra.mxu1 %vm3707_vm2, %v3730_v5 }
 0x61b   : > { %2822 = vmatprep.subr.msk.bf16.mxu1 %vm3707_vm2, %v3740_v13 }
 0x622   : > { %2825 = vmatpush3.bf16.xpose.msk.msra.mxu1 %vm3707_vm2, %v3740_v13 }
 0x623   : > { %2828 = vmatprep.subr.msk.bf16.mxu1 %vm3707_vm2, %v3752_v20 }
 0x62a   : > { %2831 = vmatpush3.bf16.xpose.msk.msra.mxu1 %vm3707_vm2, %v3752_v20 }
 0x62b   : > { %2834 = vmatprep.subr.msk.bf16.mxu1 %vm3707_vm2, %v3763_v26 }
 0x632   : > { %2837 = vmatpush3.bf16.xpose.msk.msra.mxu1 %vm3707_vm2, %v3763_v26 }
 0x633   : > { %2840 = vmatprep.subr.msk.bf16.mxu1 %vm3707_vm2, %v3771_v29 }
 0x63a   : > { %2843 = vmatpush3.bf16.xpose.msk.msra.mxu1 %vm3707_vm2, %v3771_v29 }
 0x63b   : > { %2846 = vmatprep.subr.msk.bf16.mxu1 %vm3707_vm2, %v3782_v32 }
 0x642   : > { %2849 = vmatpush3.bf16.xpose.msk.msra.mxu1 %vm3707_vm2, %v3782_v32 }
 0x643   : > { %2931 = vmatprep.subr.bf16.mxu1 %v3806_v48 }
 0x649   : > { %2459 = vmatmul.mubr.msk.f32.vlgmr.msra.gmra.mrb[8].mxu1 %vm726_vm1, %v1251_v16 }
 0x64a   : > { %2461 = vmatprep.mubr.msk.f32.mxu1 %vm726_vm1, %v1253_v17  ;;  %2933 = vmatpush3.bf16.msra.mxu1 %v3806_v48 }
 0x64b   : > { %2935 = vmatprep.subr.bf16.mxu1 %v3808_v52 }
 0x64d   : > { %2462 = vmatmul.mubr.msk.f32.gmra.mrb[10].mxu1 %vm726_vm1, %v1255_v18 }
 0x64e   : > { %2937 = vmatpush3.bf16.msra.mxu1 %v3808_v52 }
 0x64f   : > { %2939 = vmatprep.subr.bf16.mxu1 %v3815_v56 }
 0x652   : > { %2941 = vmatpush3.bf16.msra.mxu1 %v3815_v56 }
 0x653   : > { %2943 = vmatprep.subr.bf16.mxu1 %v3821_v59 }
 0x656   : > { %2945 = vmatpush3.bf16.msra.mxu1 %v3821_v59 }
 0x657   : > { %2947 = vmatprep.subr.bf16.mxu1 %v3827_v62 }
 0x65a   : > { %2949 = vmatpush3.bf16.msra.mxu1 %v3827_v62 }
 0x65b   : > { %2951 = vmatprep.subr.bf16.mxu1 %v3836_v6 }
 0x65e   : > { %2953 = vmatpush3.bf16.msra.mxu1 %v3836_v6 }
 0x65f   : > { %2955 = vmatprep.subr.bf16.mxu1 %v3842_v9 }
 0x662   : > { %2957 = vmatpush3.bf16.msra.mxu1 %v3842_v9 }
 0x663   : > { %2959 = vmatprep.subr.bf16.mxu1 %v3848_v12 }
 0x666   : > { %2961 = vmatpush3.bf16.msra.mxu1 %v3848_v12 }
 0x6dc   : > { %v4041_v48 = vpop.f32.mrb[4].mxu1 }
 0x6dd   : > { %v4043_v52 = vpop.f32.mrb[5].mxu1 }
 0x6e3   : > { %v4045_v56 = vpop.f32.mrb[6].mxu1 }
 0x6e4   : > { %v4047_v59 = vpop.f32.mrb[7].mxu1 }
 0x71c   : > { %v2460_v62 = vpop.f32.mrb[8].mxu1 }
 0x71d   : > { %1351 = vmax.xlane.f32.xlu1 %v2460_v62  ;;  %v1330_v19 = vpop.f32.mrb[9].mxu1 }
 0x71e   : > { %1349 = vmax.xlane.f32.xlu0 %v1330_v19 }
 0x720   : > { %v2463_v6 = vpop.f32.mrb[10].mxu1 }
 0x721   : > { %v1340_v21 = vpop.f32.mrb[11].mxu1 }
 0x722   : > { %1353 = vmax.xlane.f32.xlu0 %v1340_v21 }
 0x726   : > { %1355 = vmax.xlane.f32.xlu0 %v2463_v6 }
 0x72e   : > { %1497 = vrot.lane.b32.xlu1 %v3794_v38, %s3345_s4 }
 0x732   : > { %1499 = vrot.lane.b32.xlu1 %v3798_v41, %s3345_s4 }
 0x736   : > { %1501 = vrot.lane.b32.xlu1 %v3802_v44, %s3345_s4 }
 0x73c   : > { %1495 = vrot.lane.b32.xlu0 %v3790_v35, %s3345_s4 }
 0x7aa   : > { %v1352_v9 = vpop.xlane.xlu1 %1351 }
 0x7ab   : > { %v1358_v12 = vsub.f32 %v2460_v62, %v1352_v9  ;;  %v1350_v22 = vpop.xlane.xlu0 %1349 }
 0x7ac   : > { %v1357_v23 = vsub.f32 %v1330_v19, %v1350_v22 }
 0x7ad   : > { %v1363_v24 = vmul.f32 1.442695, %v1358_v12 }
 0x7ae   : > { %v1361_v25 = vmul.f32 1.442695, %v1357_v23 }
 0x7af   : > { %v1354_v27 = vpop.xlane.xlu0 %1353 }
 0x7b0   : > { %3121 = vpow2.f32 %v1361_v25  ;;  %v1359_v34 = vsub.f32 %v1340_v21, %v1354_v27 }
 0x7b1   : > { %3123 = vpow2.f32 %v1363_v24 }
 0x7b2   : > { %v1365_v38 = vmul.f32 1.442695, %v1359_v34 }
 0x7b3   : > { %v1356_v36 = vpop.xlane.xlu0 %1355 }
 0x7b4   : > { %3125 = vpow2.f32 %v1365_v38  ;;  %v1360_v41 = vsub.f32 %v2463_v6, %v1356_v36 }
 0x7b6   : > { %v1367_v37 = vmul.f32 1.442695, %v1360_v41 }
 0x7b7   : > { %v1496_v47 = vpop.permute.xlu0 %1495 }
 0x7b8   : > { %3127 = vpow2.f32 %v1367_v37 }
 0x7ba   : > { %v3122_v44 = vpop.eup %3121 }
 0x7bb   : > { %v3124_v39 = vpop.eup %3123  ;;  %2496 = vmatprep.mubr.f32.mxu0 %v3122_v44 }
 0x7bc   : > { %2497 = vmatmul.mubr.f32.vlgmr.msra.gmra.mrb[16].mxu0 %v3124_v39 }
 0x7bd   : > { %2887 = vmatpush3.bf16.xpose.msk.msra.mxu0 %vm3707_vm2, %v3703_v50  ;;  %v1498_v50 = vpop.permute.xlu1 %1497 }
 0x7be   : > { %v3126_v35 = vpop.eup %3125  ;;  %2890 = vmatprep.subr.msk.bf16.mxu0 %vm3707_vm2, %v3711_v54 }
 0x7bf   : > { %2499 = vmatprep.mubr.f32.mxu0 %v3126_v35 }
 0x7c2   : > { %v3128_v46 = vpop.eup %3127 }
 0x7c3   : > { %2500 = vmatmul.mubr.f32.gmra.mrb[18].mxu0 %v3128_v46 }
 0x7c4   : > { %2534 = vmatprep.mubr.msk.f32.mxu0 %vm726_vm1, %v1496_v47 }
 0x7c5   : > { %2893 = vmatpush3.bf16.xpose.msk.msra.mxu0 %vm3707_vm2, %v3711_v54  ;;  %v1500_v54 = vpop.permute.xlu1 %1499 }
 0x7c6   : > { %2896 = vmatprep.subr.msk.bf16.mxu0 %vm3707_vm2, %v3730_v5 }
 0x7cd   : > { %2899 = vmatpush3.bf16.xpose.msk.msra.mxu0 %vm3707_vm2, %v3730_v5  ;;  %v1502_v5 = vpop.permute.xlu1 %1501 }
 0x7ce   : > { %2902 = vmatprep.subr.msk.bf16.mxu0 %vm3707_vm2, %v3740_v13 }
 0x7d5   : > { %2905 = vmatpush3.bf16.xpose.msk.msra.mxu0 %vm3707_vm2, %v3740_v13 }
 0x7d6   : > { %2908 = vmatprep.subr.msk.bf16.mxu0 %vm3707_vm2, %v3752_v20 }
 0x7dd   : > { %2911 = vmatpush3.bf16.xpose.msk.msra.mxu0 %vm3707_vm2, %v3752_v20 }
 0x7de   : > { %2914 = vmatprep.subr.msk.bf16.mxu0 %vm3707_vm2, %v3763_v26 }
 0x7e5   : > { %2917 = vmatpush3.bf16.xpose.msk.msra.mxu0 %vm3707_vm2, %v3763_v26 }
 0x7e6   : > { %2920 = vmatprep.subr.msk.bf16.mxu0 %vm3707_vm2, %v3771_v29 }
 0x7ed   : > { %2923 = vmatpush3.bf16.xpose.msk.msra.mxu0 %vm3707_vm2, %v3771_v29 }
 0x7ee   : > { %2926 = vmatprep.subr.msk.bf16.mxu0 %vm3707_vm2, %v3782_v32 }
 0x7f5   : > { %2929 = vmatpush3.bf16.xpose.msk.msra.mxu0 %vm3707_vm2, %v3782_v32 }
 0x7fc   : > { %2535 = vmatmul.mubr.msk.f32.vlgmr.msra.gmra.mrb[20].mxu0 %vm726_vm1, %v1498_v50 }
 0x7fd   : > { %2537 = vmatprep.mubr.msk.f32.mxu0 %vm726_vm1, %v1500_v54 }
 0x800   : > { %2538 = vmatmul.mubr.msk.f32.gmra.mrb[22].mxu0 %vm726_vm1, %v1502_v5 }
 0x88f   : > { %v4106_v13 = vpop.f32.mrb[16].mxu0 }
 0x890   : > { %v4108_v20 = vpop.f32.mrb[17].mxu0 }
 0x896   : > { %v4110_v26 = vpop.f32.mrb[18].mxu0 }
 0x897   : > { %v4112_v29 = vpop.f32.mrb[19].mxu0 }
 0x8cf   : > { %v2536_v49 = vpop.f32.mrb[20].mxu0 }
 0x8d0   : > { %1598 = vmax.xlane.f32.xlu1 %v2536_v49  ;;  %v1577_v51 = vpop.f32.mrb[21].mxu0 }
 0x8d1   : > { %1596 = vmax.xlane.f32.xlu0 %v1577_v51 }
 0x8d3   : > { %v2539_v32 = vpop.f32.mrb[22].mxu0 }
 0x8d4   : > { %1124 = vadd.xlane.f32.xlu1 %v3966_v10  ;;  %v1587_v53 = vpop.f32.mrb[23].mxu0 }
 0x8d5   : > { %1600 = vmax.xlane.f32.xlu0 %v1587_v53 }
 0x8d8   : > { %1128 = vadd.xlane.f32.xlu1 %v3979_v14 }
 0x8d9   : > { %1602 = vmax.xlane.f32.xlu0 %v2539_v32 }
 0x8dc   : > { %1371 = vadd.xlane.f32.xlu1 %v3124_v39 }
 0x8dd   : > { %1122 = vadd.xlane.f32.xlu0 %v3964_v8 }
 0x8e0   : > { %1375 = vadd.xlane.f32.xlu1 %v3128_v46 }
 0x8e1   : > { %1126 = vadd.xlane.f32.xlu0 %v3973_v11 }
 0x8e5   : > { %1369 = vadd.xlane.f32.xlu0 %v3122_v44 }
 0x8e9   : > { %1373 = vadd.xlane.f32.xlu0 %v3126_v35 }
 0x95d   : > { %v1599_v55 = vpop.xlane.xlu1 %1598 }
 0x95e   : > { %v1605_v57 = vsub.f32 %v2536_v49, %v1599_v55  ;;  %v1597_v58 = vpop.xlane.xlu0 %1596 }
 0x95f   : > { %v1604_v60 = vsub.f32 %v1577_v51, %v1597_v58 }
 0x960   : > { %v1610_v61 = vmul.f32 1.442695, %v1605_v57 }
 0x961   : > { %v1608_v63 = vmul.f32 1.442695, %v1604_v60  ;;  %v1125_v17 = vpop.xlane.xlu1 %1124 }
 0x962   : > { %3129 = vpow2.f32 %v1610_v61  ;;  %v1601_v0 = vpop.xlane.xlu0 %1600 }
 0x963   : > { %3131 = vpow2.f32 %v1608_v63  ;;  %v1606_v1 = vsub.f32 %v1587_v53, %v1601_v0 }
 0x965   : > { %v1612_v2 = vmul.f32 1.442695, %v1606_v1  ;;  %v1129_v62 = vpop.xlane.xlu1 %1128 }
 0x966   : > { %v1603_v3 = vpop.xlane.xlu0 %1602 }
 0x967   : > { %3133 = vpow2.f32 %v1612_v2  ;;  %v1607_v4 = vsub.f32 %v2539_v32, %v1603_v3 }
 0x969   : > { %v1614_v7 = vmul.f32 1.442695, %v1607_v4  ;;  %v1372_v6 = vpop.xlane.xlu1 %1371 }
 0x96a   : > { %v1123_v14 = vpop.xlane.xlu0 %1122 }
 0x96b   : > { %3135 = vpow2.f32 %v1614_v7 }
 0x96c   : > { %v3130_v8 = vpop.eup %3129  ;;  %3137 = vrcp.f32 %v1125_v17 }
 0x96d   : > { %v3132_v10 = vpop.eup %3131  ;;  %1618 = vadd.xlane.f32.xlu1 %v3130_v8  ;;  %3139 = vrcp.f32 %v1123_v14  ;;  %v1376_v9 = vpop.xlane.xlu1 %1375 }
 0x96e   : > { %2572 = vmatprep.mubr.f32.mxu1 %v3132_v10  ;;  %1616 = vadd.xlane.f32.xlu0 %v3132_v10  ;;  %v1127_v16 = vpop.xlane.xlu0 %1126 }
 0x96f   : > { %2573 = vmatmul.mubr.f32.vlgmr.msra.gmra.mrb[12].mxu1 %v3130_v8  ;;  %3141 = vrcp.f32 %v1127_v16 }
 0x971   : > { %v3134_v11 = vpop.eup %3133 }
 0x972   : > { %1620 = vadd.xlane.f32.xlu0 %v3134_v11  ;;  %2575 = vmatprep.mubr.f32.mxu1 %v3134_v11  ;;  %v1370_v18 = vpop.xlane.xlu0 %1369 }
 0x973   : > { %3143 = vrcp.f32 %v1370_v18 }
 0x974   : > { %3145 = vrcp.f32 %v1129_v62 }
 0x975   : > { %v3136_v15 = vpop.eup %3135 }
 0x976   : > { %892 = vadd.xlane.f32.xlu0 %v3868_v28  ;;  %1622 = vadd.xlane.f32.xlu1 %v3136_v15  ;;  %v1374_v19 = vpop.xlane.xlu0 %1373  ;;  %v3138_v28 = vpop.eup %3137 }
 0x977   : > { %2576 = vmatmul.mubr.f32.gmra.mrb[14].mxu1 %v3136_v15  ;;  %3147 = vrcp.f32 %v1374_v19  ;;  %v3140_v21 = vpop.eup %3139 }
 0x978   : > { %3149 = vrcp.f32 %v1372_v6  ;;  %v1223_v12 = vmul.f32 %v3140_v21, %v4043_v52 }
 0x979   : > { %3151 = vrcp.f32 %v1376_v9 }
 0x97a   : > { %896 = vadd.xlane.f32.xlu0 %v3880_v31  ;;  %894 = vadd.xlane.f32.xlu1 %v3871_v30  ;;  %v1224_v31 = vmul.f32 %v3138_v28, %v4041_v48  ;;  %v3142_v30 = vpop.eup %3141 }
 0x97b   : > { %v1225_v22 = vmul.f32 %v3142_v30, %v4047_v59 }
 0x97e   : > { %898 = vadd.xlane.f32.xlu1 %v3882_v33  ;;  %v3144_v33 = vpop.eup %3143 }
 0x97f   : > { %v3146_v23 = vpop.eup %3145  ;;  %v1470_v24 = vmul.f32 %v3144_v33, %v4108_v20 }
 0x980   : > { %v1226_v48 = vmul.f32 %v3146_v23, %v4045_v56 }
 0x981   : > { %v3148_v25 = vpop.eup %3147 }
 0x982   : > { %v3150_v27 = vpop.eup %3149  ;;  %v1472_v52 = vmul.f32 %v3148_v25, %v4112_v29 }
 0x983   : > { %v1471_v34 = vmul.f32 %v3150_v27, %v4106_v13  ;;  %v3152_v59 = vpop.eup %3151 }
 0x984   : > { %v1473_v38 = vmul.f32 %v3152_v59, %v4110_v26 }
 0x98f   : > { %1233 = vrot.lane.b32.xlu1 %v1224_v31, %s3345_s4 }
 0x990   : > { %1231 = vrot.lane.b32.xlu0 %v1223_v12, %s3345_s4 }
 0x993   : > { %1235 = vrot.lane.b32.xlu1 %v1225_v22, %s3345_s4 }
 0x994   : > { %1478 = vrot.lane.b32.xlu0 %v1470_v24, %s3344_s23 }
 0x997   : > { %1237 = vrot.lane.b32.xlu1 %v1226_v48, %s3345_s4 }
 0x998   : > { %1482 = vrot.lane.b32.xlu0 %v1472_v52, %s3344_s23 }
 0x99b   : > { %1480 = vrot.lane.b32.xlu1 %v1471_v34, %s3344_s23 }
 0x99f   : > { %1484 = vrot.lane.b32.xlu1 %v1473_v38, %s3344_s23 }
 0x9fa   : > { %v1619_v41 = vpop.xlane.xlu1 %1618 }
 0x9fb   : > { %v1617_v36 = vpop.xlane.xlu0 %1616 }
 0x9ff   : > { %v1621_v37 = vpop.xlane.xlu0 %1620 }
 0xa03   : > { %v893_v56 = vpop.xlane.xlu0 %892  ;;  %v1623_v44 = vpop.xlane.xlu1 %1622 }
 0xa04   : > { %3153 = vrcp.f32 %v893_v56 }
 0xa07   : > { %v897_v39 = vpop.xlane.xlu0 %896  ;;  %v895_v35 = vpop.xlane.xlu1 %894 }
 0xa08   : > { %3155 = vrcp.f32 %v897_v39 }
 0xa09   : > { %3157 = vrcp.f32 %v895_v35 }
 0xa0b   : > { %v1232_v46 = vpop.permute.xlu0 %1231  ;;  %v899_v47 = vpop.xlane.xlu1 %898 }
 0xa0c   : > { %3159 = vrcp.f32 %v899_v47 }
 0xa0d   : > { %3161 = vrcp.f32 %v1619_v41 }
 0xa0e   : > { %v3154_v50 = vpop.eup %3153  ;;  %3163 = vrcp.f32 %v1617_v36 }
 0xa0f   : > { %v993_v54 = vmul.f32 %v3154_v50, %v3950_v42  ;;  %v1234_v5 = vpop.permute.xlu1 %1233  ;;  %v1479_v13 = vpop.permute.xlu0 %1478  ;;  %3165 = vrcp.f32 %v1623_v44 }
 0xa10   : > { %3167 = vrcp.f32 %v1621_v37 }
 0xa11   : > { %997 = vst.msk [vmem:[%s3561_s22] sm:$0xff] %vm726_vm1, %v993_v54 }
 0xa12   : > { %v3156_v20 = vpop.eup %3155  ;;  %1244 = vst.msk [vmem:[%s3561_s22] sm:$0xff] %vm1243_vm3, %v1232_v46 }
 0xa13   : > { %v3158_v26 = vpop.eup %3157  ;;  %1491 = vst.msk [vmem:[%s3561_s22] sm:$0xff] %vm1490_vm4, %v1479_v13  ;;  %v995_v42 = vmul.f32 %v3156_v20, %v3954_v45  ;;  %v1236_v29 = vpop.permute.xlu1 %1235 }
 0xa14   : > { %v994_v49 = vmul.f32 %v3158_v26, %v3948_v40  ;;  %v1483_v32 = vpop.permute.xlu0 %1482 }
 0xa15   : > { %999 = vst.msk [vmem:[%s3561_s22 + $0x10] sm:$0xff] %vm726_vm1, %v995_v42 }
 0xa16   : > { %v3160_v51 = vpop.eup %3159  ;;  %998 = vst.msk [vmem:[%s3561_s22 + $0x8] sm:$0xff] %vm726_vm1, %v994_v49 }
 0xa17   : > { %1246 = vst.msk [vmem:[%s3561_s22 + $0x10] sm:$0xff] %vm1243_vm3, %v1236_v29  ;;  %1245 = vst.msk [vmem:[%s3561_s22 + $0x8] sm:$0xff] %vm1243_vm3, %v1234_v5  ;;  %v996_v53 = vmul.f32 %v3160_v51, %v3952_v43  ;;  %v1238_v55 = vpop.permute.xlu1 %1237  ;;  %v3162_v57 = vpop.eup %3161 }
 0xa18   : > { %1493 = vst.msk [vmem:[%s3561_s22 + $0x10] sm:$0xff] %vm1490_vm4, %v1483_v32  ;;  %v3164_v43 = vpop.eup %3163 }
 0xa19   : > { %1000 = vst.msk [vmem:[%s3561_s22 + $0x18] sm:$0xff] %vm726_vm1, %v996_v53  ;;  %v3166_v0 = vpop.eup %3165 }
 0xa1a   : > { %1247 = vst.msk [vmem:[%s3561_s22 + $0x18] sm:$0xff] %vm1243_vm3, %v1238_v55  ;;  %v3168_v2 = vpop.eup %3167 }
 0xa1b   : > { %v1481_v40 = vpop.permute.xlu1 %1480 }
 0xa1c   : > { %1492 = vst.msk [vmem:[%s3561_s22 + $0x8] sm:$0xff] %vm1490_vm4, %v1481_v40 }
 0xa1f   : > { %v1485_v45 = vpop.permute.xlu1 %1484 }
 0xa20   : > { %1494 = vst.msk [vmem:[%s3561_s22 + $0x18] sm:$0xff] %vm1490_vm4, %v1485_v45 }
 0xa42   : > { %v2574_v58 = vpop.f32.mrb[12].mxu1 }
 0xa43   : > { %v1718_v60 = vmul.f32 %v3162_v57, %v2574_v58  ;;  %v1690_v61 = vpop.f32.mrb[13].mxu1 }
 0xa44   : > { %v1717_v63 = vmul.f32 %v3164_v43, %v1690_v61 }
 0xa45   : > { %1727 = vrot.lane.b32.xlu1 %v1718_v60, %s3343_s5 }
 0xa46   : > { %1725 = vrot.lane.b32.xlu0 %v1717_v63, %s3343_s5 }
 0xa4a   : > { %v2577_v1 = vpop.f32.mrb[14].mxu1 }
 0xa4b   : > { %v1720_v3 = vmul.f32 %v3166_v0, %v2577_v1  ;;  %v1700_v4 = vpop.f32.mrb[15].mxu1 }
 0xa4c   : > { %v1719_v7 = vmul.f32 %v3168_v2, %v1700_v4 }
 0xa4d   : > { %1731 = vrot.lane.b32.xlu1 %v1720_v3, %s3343_s5 }
 0xa4e   : > { %1729 = vrot.lane.b32.xlu0 %v1719_v7, %s3343_s5  ;;  %s3203_s5 = sshll.u32 %s3346_s20, 4  ;;  %s3204_s5 = int_to_ptr.vmem [resolvable:$false] %s3203_s5 }
 0xa4f   : > { %s3205_s23 = scalar_lea.vmem %s3204_s5, 1024  ;;  %p3206_p10 = scmp.lt.s32.totalorder %s4181_s11, %s3204_s5 }
 0xa50   : > { %p3207_p6 = scmp.lt.s32.totalorder %s3205_s23, %s3199_s19 }
 0xa52   : > { %p3208_p12 = por %p3207_p6, %p3206_p10 }
 0xa54   : > { %p3209_p0 = pnand %p3208_p12, %p3202_p8 }
 0xab7   : > { %v1728_v8 = vpop.permute.xlu1 %1727 }
 0xab8   : > { %1739 = vst.msk [vmem:[%s3561_s22 + $0x8] sm:$0xff] %vm1737_vm5, %v1728_v8  ;;  %v1726_v10 = vpop.permute.xlu0 %1725 }
 0xab9   : > { %1738 = vst.msk [vmem:[%s3561_s22] sm:$0xff] %vm1737_vm5, %v1726_v10 }
 0xabf   : > { %v1732_v11 = vpop.permute.xlu1 %1731 }
 0xac0   : > { %1741 = vst.msk [vmem:[%s3561_s22 + $0x18] sm:$0xff] %vm1737_vm5, %v1732_v11  ;;  %v1730_v14 = vpop.permute.xlu0 %1729 }
 0xac1   : > { %1740 = vst.msk [vmem:[%s3561_s22 + $0x10] sm:$0xff] %vm1737_vm5, %v1730_v14 }
 0xac2   : > { %3212 = shalt.err (!%p3209_p0)
}
 0xac3   : > { %s3213_s22 = scalar_lea.hbm %s4179_s10, 512  ;;  %s3217_s28 = scalar_lea.hbm %s4263_s3, 8192 }
 0xac4   : > { %p3214_p5 = scmp.ne.s32.totalorder %s4179_s10, %s3213_s22  ;;  %p3218_p13 = scmp.lt.u32.totalorder %s4179_s10, %s4263_s3 }
 0xac5   : > { %p3219_p3 = scmp.lt.u32.totalorder %s3217_s28, %s3213_s22  ;;  %p3221_p4 = scmp.lt.u32.totalorder %s3213_s22, %s4179_s10 }
 0xac6   : > { %p3215_p9 = pnand %p3214_p5, %p4286_p1 }
 0xac7   : > { %p3220_p7 = por %p3219_p3, %p3218_p13 }
 0xac8   : > { %p3216_p11 = pneg %p3215_p9 }
 0xac9   : > { %p3222_p2 = por %p3221_p4, %p3220_p7 }
 0xacb   : > { %p3223_p8 = pnand %p3222_p2, %p3216_p11 }
 0xacd   : > { %3226 = shalt.err (!%p3223_p8)
}
 0xace   : > { %s3347_s29 = smov 128   ;;  %s3348_s1 = smov 256  }
 0xacf   : > { %s3349_s8 = smov 8  }
 0xad0   : > { %2980 = dma.vmem_to_hbm [thread:$0]  (%p4286_p1), %s4181_s11, 512, %s4179_s10, %s4187_s18, %s3347_s29, %s3348_s1, %s3349_s8  }
 0xad1 PF: > { %p2991_p10 = scmp.ge.s32.totalorder %s3337_s24, 2  ;;  %s1775_s15 = sand.u32 1, %s3289_s12  }
 0xad2   : > { %p4287_p6 = scmp.ne.s32.totalorder %s4280_s30, 0  ;;  %s1776_s19 = scalar_lea.sflag [#allocation6], %s1775_s15 }
 0xad4   : > { %p2987_p12 = pnand %p2991_p10, %p4287_p6 }
 0xad6   : > { %3284 = dma.done.wait (!%p2987_p12), %s1776_s19, 512  }
 0xad7   : > { %3286 = vsyncadd (!%p2987_p12), %s1776_s19, 4294966784  ;;  %s19_s24 = sadd.s32 1, %s3337_s24   ;;  %s4289_s19 = sld [smem:[#allocation10_spill]] }
 0xad8   : > { %p4216_p0 = scmp.ge.s32.totalorder %s19_s24, 18   ;;  %s4290_s26 = sld [smem:[#allocation11_spill]] }
 0xad9   : > { %s4291_s30 = sld [smem:[#allocation12_spill]]  ;;  %s4292_s22 = sld [smem:[#allocation13_spill]] }
 0xada   : > { %s4293_s23 = sld [smem:[#allocation14_spill]]  ;;  %s4295_s12 = smov %s3293_s13 }
 0xadb   : > { %s4296_s13 = smov %s3297_s14  ;;  %s4297_s14 = smov %s3484_s27 }
 0xadc   : > { %s4298_s15 = smov %s3305_s16  ;;  %s4299_s16 = smov %s3309_s17 }
 0xadd   : > { %s4300_s17 = smov %s3470_s9  ;;  %s4301_s18 = smov %s3325_s21 }
 0xade   : > { %s4302_s20 = smov %s4290_s26  ;;  %18 = sbr.rel (!%p4216_p0) target bundleno = 12 (0xc), region = 88 }
 0xadf   : > { %s4303_s21 = smov %s4291_s30 }
 0xae5   :  { %1781 = vsyncpa [#allocation5], 1 }
 0xae6   :  { %1783 = vsyncpa [#allocation5 + $0x1], 1 }
 0xae7   :  { %1784 = vsyncpa [#allocation6], 1 }
 0xae8   :  { %1786 = vsyncpa [#allocation6 + $0x1], 1 }

</bundles_post_ra>
